<compile_context>
chip_gen: v7x
topology: tpu7x:2x2x1
jax: 0.10.0
libtpu: 0.0.40
codegen_flags: <defaults>
</compile_context>

<pallas_src>
import numpy as np
import jax
import jax.numpy as jnp
from jax.experimental import pallas as pl
from jax.experimental.pallas import tpu as pltpu

PADDING = 3
K = 2 * PADDING + 1        # 7x7 kernel
C_IN = 2                   # PyTorch module stacks two copies of x (x and dropout(x))


def _atten_kernel(x_ref, w_ref, out_ref, xpad_ref):
    # x_ref   : (BB, H, W)         VMEM tile: BB batch elements (unpadded)
    # w_ref   : (K*K,)             pre-summed conv weights in SMEM (scalar reads)
    # out_ref : (BB, H, W)         output tile
    # xpad_ref: (BB, H+2p, W+2p)   VMEM scratch used for in-kernel zero padding
    BB, H, W = out_ref.shape

    # In-kernel zero padding: no padded copy of the input ever exists in HBM.
    xpad_ref[...] = jnp.zeros_like(xpad_ref)
    xpad_ref[:, PADDING:PADDING + H, PADDING:PADDING + W] = x_ref[...]

    # Two accumulator chains (even/odd kh) to break the long dependent-add chain.
    acc0 = jnp.zeros((BB, H, W), dtype=jnp.float32)
    acc1 = jnp.zeros((BB, H, W), dtype=jnp.float32)
    for kh in range(K):
        # Load the (BB, H, W+2p) row slab ONCE per kh; all 7 kw shifts below are
        # slices of this loaded value (no re-load per tap).
        slab = xpad_ref[:, kh:kh + H, :]
        for kw in range(K):
            w_s = w_ref[kh * K + kw]                     # scalar from SMEM
            tap = w_s * slab[:, :, kw:kw + W]            # scalar * vector MAC (VPU)
            if kh % 2 == 0:
                acc0 = acc0 + tap
            else:
                acc1 = acc1 + tap
    out_ref[...] = jax.nn.sigmoid(acc0 + acc1).astype(out_ref.dtype)


def _pick_batch_block(B, H, W, budget_bytes=8 * 1024 * 1024):
    """Largest divisor of B whose per-step VMEM footprint stays under budget."""
    Hp, Wp = H + 2 * PADDING, W + 2 * PADDING
    # per-element bytes: padded scratch + double-buffered in + double-buffered out + acc
    per_elem = 4 * (Hp * Wp + 2 * H * W + 2 * H * W + H * W)
    bb = max(1, min(B, budget_bytes // max(per_elem, 1)))
    while B % bb:
        bb -= 1
    return bb


def atten_forward(x, weight):
    """x: (B, H, W) float32; weight: (1, 2, K, K) float32 -> (B, H, W)."""
    B, H, W = x.shape
    Hp, Wp = H + 2 * PADDING, W + 2 * PADDING
    bb = _pick_batch_block(B, H, W)

    # Dropout is identity in eval mode, so both stacked channels equal x: fold the
    # two input channels by pre-summing the conv weights -> single-channel conv.
    w_eff = (weight[0, 0] + weight[0, 1]).reshape(K * K).astype(jnp.float32)

    return pl.pallas_call(
        _atten_kernel,
        out_shape=jax.ShapeDtypeStruct((B, H, W), x.dtype),
        grid_spec=pltpu.PrefetchScalarGridSpec(
            num_scalar_prefetch=0,
            grid=(B // bb,),
            in_specs=[
                # bb batch elements' (unpadded) images per grid step
                pl.BlockSpec((bb, H, W), lambda b: (b, 0, 0)),
                # 49 pre-summed conv weights, whole array in SMEM (scalar reads)
                pl.BlockSpec(memory_space=pltpu.MemorySpace.SMEM),
            ],
            out_specs=pl.BlockSpec((bb, H, W), lambda b: (b, 0, 0)),
            scratch_shapes=[pltpu.VMEM((bb, Hp, Wp), jnp.float32)],
        ),
        compiler_params=pltpu.CompilerParams(
            dimension_semantics=("parallel",),       # batch-block axis
            vmem_limit_bytes=32 * 1024 * 1024,       # lift v5e's 16 MiB scoped default
        ),
    )(x, w_eff)


def _reference(x, weight):
    """Pure-JAX reference (lax conv) of the same eval-mode forward."""
    xt = jnp.stack([x, x], axis=1)                                   # (B, 2, H, W)
    y = jax.lax.conv_general_dilated(
        xt, weight,
        window_strides=(1, 1),
        padding=[(PADDING, PADDING), (PADDING, PADDING)],
        dimension_numbers=("NCHW", "OIHW", "NCHW"),
    )
    return jax.nn.sigmoid(y[:, 0, :, :])


if __name__ == "__main__":
    key = jax.random.PRNGKey(0)
    kx, kw_key = jax.random.split(key)

    B, H, W = 2, 16, 16
    x = jax.random.normal(kx, (B, H, W), dtype=jnp.float32)

    # Deterministic conv weight init (PyTorch-style kaiming-uniform bound 1/sqrt(fan_in)).
    fan_in = C_IN * K * K
    bound = 1.0 / np.sqrt(fan_in)
    weight = jax.random.uniform(kw_key, (1, C_IN, K, K), dtype=jnp.float32,
                                minval=-bound, maxval=bound)

    out = atten_forward(x, weight)
    out = jax.block_until_ready(out)

    ref = _reference(x, weight)
    assert out.shape == (B, H, W)
    assert np.allclose(np.asarray(out), np.asarray(ref), atol=1e-5, rtol=1e-5), \
        "Pallas kernel disagrees with JAX reference"

    print("KERNEL_OK")
</pallas_src>

<mosaic_0001>
module attributes {stable_mosaic.version = 11 : i64} {
  func.func @_atten_kernel(%arg0: i32, %arg1: memref<2x16x16xf32, #tpu.memory_space<vmem>>, %arg2: memref<49xf32, #tpu.memory_space<smem>>, %arg3: memref<2x16x16xf32, #tpu.memory_space<vmem>>, %arg4: memref<2x22x22xf32, #tpu.memory_space<vmem>>) attributes {dimension_semantics = [#tpu.dimension_semantics<parallel>], iteration_bounds = array<i64: 1>, scalar_prefetch = 0 : i64, scratch_operands = 1 : i64, tpu.core_type = #tpu.core_type<tc>, window_params = [{transform_indices = @transform_0, window_bounds = array<i64: 2, 16, 16>}, {transform_indices = @transform_1, window_bounds = array<i64: 49>}, {transform_indices = @transform_2, window_bounds = array<i64: 2, 16, 16>}]} {
    %cst = arith.constant 0.000000e+00 : f32
    %0 = vector.broadcast %cst : f32 to vector<2x22x22xf32>
    %c0 = arith.constant 0 : index
    %c0_0 = arith.constant 0 : index
    %c0_1 = arith.constant 0 : index
    %1 = vector.load %arg4[%c0, %c0_0, %c0_1] : memref<2x22x22xf32, #tpu.memory_space<vmem>>, vector<2x22x22xf32>
    tpu.vector_store %arg4[%c0, %c0_0, %c0_1], %0 {strides = array<i32>} : memref<2x22x22xf32, #tpu.memory_space<vmem>>, vector<2x22x22xf32>,
    %c0_2 = arith.constant 0 : index
    %c0_3 = arith.constant 0 : index
    %c0_4 = arith.constant 0 : index
    %2 = vector.load %arg1[%c0_2, %c0_3, %c0_4] : memref<2x16x16xf32, #tpu.memory_space<vmem>>, vector<2x16x16xf32>
    %c0_5 = arith.constant 0 : index
    %c3 = arith.constant 3 : index
    %c3_6 = arith.constant 3 : index
    %3 = vector.load %arg4[%c0_5, %c3, %c3_6] : memref<2x22x22xf32, #tpu.memory_space<vmem>>, vector<2x16x16xf32>
    tpu.vector_store %arg4[%c0_5, %c3, %c3_6], %2 {strides = array<i32>} : memref<2x22x22xf32, #tpu.memory_space<vmem>>, vector<2x16x16xf32>,
    %cst_7 = arith.constant 0.000000e+00 : f32
    %4 = vector.broadcast %cst_7 : f32 to vector<2x16x16xf32>
    %cst_8 = arith.constant 0.000000e+00 : f32
    %5 = vector.broadcast %cst_8 : f32 to vector<2x16x16xf32>
    %c0_9 = arith.constant 0 : index
    %c0_10 = arith.constant 0 : index
    %c0_11 = arith.constant 0 : index
    %6 = vector.load %arg4[%c0_9, %c0_10, %c0_11] : memref<2x22x22xf32, #tpu.memory_space<vmem>>, vector<2x16x22xf32>
    %c0_12 = arith.constant 0 : index
    %7 = memref.load %arg2[%c0_12] : memref<49xf32, #tpu.memory_space<smem>>
    %8 = vector.extract_strided_slice %6 {offsets = [0, 0, 0], sizes = [2, 16, 16], strides = [1, 1, 1]} : vector<2x16x22xf32> to vector<2x16x16xf32>
    %9 = vector.broadcast %7 : f32 to vector<2x16x16xf32>
    %10 = arith.mulf %9, %8 : vector<2x16x16xf32>
    %11 = arith.addf %4, %10 : vector<2x16x16xf32>
    %c1 = arith.constant 1 : index
    %12 = memref.load %arg2[%c1] : memref<49xf32, #tpu.memory_space<smem>>
    %13 = vector.extract_strided_slice %6 {offsets = [0, 0, 1], sizes = [2, 16, 16], strides = [1, 1, 1]} : vector<2x16x22xf32> to vector<2x16x16xf32>
    %14 = vector.broadcast %12 : f32 to vector<2x16x16xf32>
    %15 = arith.mulf %14, %13 : vector<2x16x16xf32>
    %16 = arith.addf %11, %15 : vector<2x16x16xf32>
    %c2 = arith.constant 2 : index
    %17 = memref.load %arg2[%c2] : memref<49xf32, #tpu.memory_space<smem>>
    %18 = vector.extract_strided_slice %6 {offsets = [0, 0, 2], sizes = [2, 16, 16], strides = [1, 1, 1]} : vector<2x16x22xf32> to vector<2x16x16xf32>
    %19 = vector.broadcast %17 : f32 to vector<2x16x16xf32>
    %20 = arith.mulf %19, %18 : vector<2x16x16xf32>
    %21 = arith.addf %16, %20 : vector<2x16x16xf32>
    %c3_13 = arith.constant 3 : index
    %22 = memref.load %arg2[%c3_13] : memref<49xf32, #tpu.memory_space<smem>>
    %23 = vector.extract_strided_slice %6 {offsets = [0, 0, 3], sizes = [2, 16, 16], strides = [1, 1, 1]} : vector<2x16x22xf32> to vector<2x16x16xf32>
    %24 = vector.broadcast %22 : f32 to vector<2x16x16xf32>
    %25 = arith.mulf %24, %23 : vector<2x16x16xf32>
    %26 = arith.addf %21, %25 : vector<2x16x16xf32>
    %c4 = arith.constant 4 : index
    %27 = memref.load %arg2[%c4] : memref<49xf32, #tpu.memory_space<smem>>
    %28 = vector.extract_strided_slice %6 {offsets = [0, 0, 4], sizes = [2, 16, 16], strides = [1, 1, 1]} : vector<2x16x22xf32> to vector<2x16x16xf32>
    %29 = vector.broadcast %27 : f32 to vector<2x16x16xf32>
    %30 = arith.mulf %29, %28 : vector<2x16x16xf32>
    %31 = arith.addf %26, %30 : vector<2x16x16xf32>
    %c5 = arith.constant 5 : index
    %32 = memref.load %arg2[%c5] : memref<49xf32, #tpu.memory_space<smem>>
    %33 = vector.extract_strided_slice %6 {offsets = [0, 0, 5], sizes = [2, 16, 16], strides = [1, 1, 1]} : vector<2x16x22xf32> to vector<2x16x16xf32>
    %34 = vector.broadcast %32 : f32 to vector<2x16x16xf32>
    %35 = arith.mulf %34, %33 : vector<2x16x16xf32>
    %36 = arith.addf %31, %35 : vector<2x16x16xf32>
    %c6 = arith.constant 6 : index
    %37 = memref.load %arg2[%c6] : memref<49xf32, #tpu.memory_space<smem>>
    %38 = vector.extract_strided_slice %6 {offsets = [0, 0, 6], sizes = [2, 16, 16], strides = [1, 1, 1]} : vector<2x16x22xf32> to vector<2x16x16xf32>
    %39 = vector.broadcast %37 : f32 to vector<2x16x16xf32>
    %40 = arith.mulf %39, %38 : vector<2x16x16xf32>
    %41 = arith.addf %36, %40 : vector<2x16x16xf32>
    %c0_14 = arith.constant 0 : index
    %c1_15 = arith.constant 1 : index
    %c0_16 = arith.constant 0 : index
    %42 = vector.load %arg4[%c0_14, %c1_15, %c0_16] : memref<2x22x22xf32, #tpu.memory_space<vmem>>, vector<2x16x22xf32>
    %c7 = arith.constant 7 : index
    %43 = memref.load %arg2[%c7] : memref<49xf32, #tpu.memory_space<smem>>
    %44 = vector.extract_strided_slice %42 {offsets = [0, 0, 0], sizes = [2, 16, 16], strides = [1, 1, 1]} : vector<2x16x22xf32> to vector<2x16x16xf32>
    %45 = vector.broadcast %43 : f32 to vector<2x16x16xf32>
    %46 = arith.mulf %45, %44 : vector<2x16x16xf32>
    %47 = arith.addf %5, %46 : vector<2x16x16xf32>
    %c8 = arith.constant 8 : index
    %48 = memref.load %arg2[%c8] : memref<49xf32, #tpu.memory_space<smem>>
    %49 = vector.extract_strided_slice %42 {offsets = [0, 0, 1], sizes = [2, 16, 16], strides = [1, 1, 1]} : vector<2x16x22xf32> to vector<2x16x16xf32>
    %50 = vector.broadcast %48 : f32 to vector<2x16x16xf32>
    %51 = arith.mulf %50, %49 : vector<2x16x16xf32>
    %52 = arith.addf %47, %51 : vector<2x16x16xf32>
    %c9 = arith.constant 9 : index
    %53 = memref.load %arg2[%c9] : memref<49xf32, #tpu.memory_space<smem>>
    %54 = vector.extract_strided_slice %42 {offsets = [0, 0, 2], sizes = [2, 16, 16], strides = [1, 1, 1]} : vector<2x16x22xf32> to vector<2x16x16xf32>
    %55 = vector.broadcast %53 : f32 to vector<2x16x16xf32>
    %56 = arith.mulf %55, %54 : vector<2x16x16xf32>
    %57 = arith.addf %52, %56 : vector<2x16x16xf32>
    %c10 = arith.constant 10 : index
    %58 = memref.load %arg2[%c10] : memref<49xf32, #tpu.memory_space<smem>>
    %59 = vector.extract_strided_slice %42 {offsets = [0, 0, 3], sizes = [2, 16, 16], strides = [1, 1, 1]} : vector<2x16x22xf32> to vector<2x16x16xf32>
    %60 = vector.broadcast %58 : f32 to vector<2x16x16xf32>
    %61 = arith.mulf %60, %59 : vector<2x16x16xf32>
    %62 = arith.addf %57, %61 : vector<2x16x16xf32>
    %c11 = arith.constant 11 : index
    %63 = memref.load %arg2[%c11] : memref<49xf32, #tpu.memory_space<smem>>
    %64 = vector.extract_strided_slice %42 {offsets = [0, 0, 4], sizes = [2, 16, 16], strides = [1, 1, 1]} : vector<2x16x22xf32> to vector<2x16x16xf32>
    %65 = vector.broadcast %63 : f32 to vector<2x16x16xf32>
    %66 = arith.mulf %65, %64 : vector<2x16x16xf32>
    %67 = arith.addf %62, %66 : vector<2x16x16xf32>
    %c12 = arith.constant 12 : index
    %68 = memref.load %arg2[%c12] : memref<49xf32, #tpu.memory_space<smem>>
    %69 = vector.extract_strided_slice %42 {offsets = [0, 0, 5], sizes = [2, 16, 16], strides = [1, 1, 1]} : vector<2x16x22xf32> to vector<2x16x16xf32>
    %70 = vector.broadcast %68 : f32 to vector<2x16x16xf32>
    %71 = arith.mulf %70, %69 : vector<2x16x16xf32>
    %72 = arith.addf %67, %71 : vector<2x16x16xf32>
    %c13 = arith.constant 13 : index
    %73 = memref.load %arg2[%c13] : memref<49xf32, #tpu.memory_space<smem>>
    %74 = vector.extract_strided_slice %42 {offsets = [0, 0, 6], sizes = [2, 16, 16], strides = [1, 1, 1]} : vector<2x16x22xf32> to vector<2x16x16xf32>
    %75 = vector.broadcast %73 : f32 to vector<2x16x16xf32>
    %76 = arith.mulf %75, %74 : vector<2x16x16xf32>
    %77 = arith.addf %72, %76 : vector<2x16x16xf32>
    %c0_17 = arith.constant 0 : index
    %c2_18 = arith.constant 2 : index
    %c0_19 = arith.constant 0 : index
    %78 = vector.load %arg4[%c0_17, %c2_18, %c0_19] : memref<2x22x22xf32, #tpu.memory_space<vmem>>, vector<2x16x22xf32>
    %c14 = arith.constant 14 : index
    %79 = memref.load %arg2[%c14] : memref<49xf32, #tpu.memory_space<smem>>
    %80 = vector.extract_strided_slice %78 {offsets = [0, 0, 0], sizes = [2, 16, 16], strides = [1, 1, 1]} : vector<2x16x22xf32> to vector<2x16x16xf32>
    %81 = vector.broadcast %79 : f32 to vector<2x16x16xf32>
    %82 = arith.mulf %81, %80 : vector<2x16x16xf32>
    %83 = arith.addf %41, %82 : vector<2x16x16xf32>
    %c15 = arith.constant 15 : index
    %84 = memref.load %arg2[%c15] : memref<49xf32, #tpu.memory_space<smem>>
    %85 = vector.extract_strided_slice %78 {offsets = [0, 0, 1], sizes = [2, 16, 16], strides = [1, 1, 1]} : vector<2x16x22xf32> to vector<2x16x16xf32>
    %86 = vector.broadcast %84 : f32 to vector<2x16x16xf32>
    %87 = arith.mulf %86, %85 : vector<2x16x16xf32>
    %88 = arith.addf %83, %87 : vector<2x16x16xf32>
    %c16 = arith.constant 16 : index
    %89 = memref.load %arg2[%c16] : memref<49xf32, #tpu.memory_space<smem>>
    %90 = vector.extract_strided_slice %78 {offsets = [0, 0, 2], sizes = [2, 16, 16], strides = [1, 1, 1]} : vector<2x16x22xf32> to vector<2x16x16xf32>
    %91 = vector.broadcast %89 : f32 to vector<2x16x16xf32>
    %92 = arith.mulf %91, %90 : vector<2x16x16xf32>
    %93 = arith.addf %88, %92 : vector<2x16x16xf32>
    %c17 = arith.constant 17 : index
    %94 = memref.load %arg2[%c17] : memref<49xf32, #tpu.memory_space<smem>>
    %95 = vector.extract_strided_slice %78 {offsets = [0, 0, 3], sizes = [2, 16, 16], strides = [1, 1, 1]} : vector<2x16x22xf32> to vector<2x16x16xf32>
    %96 = vector.broadcast %94 : f32 to vector<2x16x16xf32>
    %97 = arith.mulf %96, %95 : vector<2x16x16xf32>
    %98 = arith.addf %93, %97 : vector<2x16x16xf32>
    %c18 = arith.constant 18 : index
    %99 = memref.load %arg2[%c18] : memref<49xf32, #tpu.memory_space<smem>>
    %100 = vector.extract_strided_slice %78 {offsets = [0, 0, 4], sizes = [2, 16, 16], strides = [1, 1, 1]} : vector<2x16x22xf32> to vector<2x16x16xf32>
    %101 = vector.broadcast %99 : f32 to vector<2x16x16xf32>
    %102 = arith.mulf %101, %100 : vector<2x16x16xf32>
    %103 = arith.addf %98, %102 : vector<2x16x16xf32>
    %c19 = arith.constant 19 : index
    %104 = memref.load %arg2[%c19] : memref<49xf32, #tpu.memory_space<smem>>
    %105 = vector.extract_strided_slice %78 {offsets = [0, 0, 5], sizes = [2, 16, 16], strides = [1, 1, 1]} : vector<2x16x22xf32> to vector<2x16x16xf32>
    %106 = vector.broadcast %104 : f32 to vector<2x16x16xf32>
    %107 = arith.mulf %106, %105 : vector<2x16x16xf32>
    %108 = arith.addf %103, %107 : vector<2x16x16xf32>
    %c20 = arith.constant 20 : index
    %109 = memref.load %arg2[%c20] : memref<49xf32, #tpu.memory_space<smem>>
    %110 = vector.extract_strided_slice %78 {offsets = [0, 0, 6], sizes = [2, 16, 16], strides = [1, 1, 1]} : vector<2x16x22xf32> to vector<2x16x16xf32>
    %111 = vector.broadcast %109 : f32 to vector<2x16x16xf32>
    %112 = arith.mulf %111, %110 : vector<2x16x16xf32>
    %113 = arith.addf %108, %112 : vector<2x16x16xf32>
    %c0_20 = arith.constant 0 : index
    %c3_21 = arith.constant 3 : index
    %c0_22 = arith.constant 0 : index
    %114 = vector.load %arg4[%c0_20, %c3_21, %c0_22] : memref<2x22x22xf32, #tpu.memory_space<vmem>>, vector<2x16x22xf32>
    %c21 = arith.constant 21 : index
    %115 = memref.load %arg2[%c21] : memref<49xf32, #tpu.memory_space<smem>>
    %116 = vector.extract_strided_slice %114 {offsets = [0, 0, 0], sizes = [2, 16, 16], strides = [1, 1, 1]} : vector<2x16x22xf32> to vector<2x16x16xf32>
    %117 = vector.broadcast %115 : f32 to vector<2x16x16xf32>
    %118 = arith.mulf %117, %116 : vector<2x16x16xf32>
    %119 = arith.addf %77, %118 : vector<2x16x16xf32>
    %c22 = arith.constant 22 : index
    %120 = memref.load %arg2[%c22] : memref<49xf32, #tpu.memory_space<smem>>
    %121 = vector.extract_strided_slice %114 {offsets = [0, 0, 1], sizes = [2, 16, 16], strides = [1, 1, 1]} : vector<2x16x22xf32> to vector<2x16x16xf32>
    %122 = vector.broadcast %120 : f32 to vector<2x16x16xf32>
    %123 = arith.mulf %122, %121 : vector<2x16x16xf32>
    %124 = arith.addf %119, %123 : vector<2x16x16xf32>
    %c23 = arith.constant 23 : index
    %125 = memref.load %arg2[%c23] : memref<49xf32, #tpu.memory_space<smem>>
    %126 = vector.extract_strided_slice %114 {offsets = [0, 0, 2], sizes = [2, 16, 16], strides = [1, 1, 1]} : vector<2x16x22xf32> to vector<2x16x16xf32>
    %127 = vector.broadcast %125 : f32 to vector<2x16x16xf32>
    %128 = arith.mulf %127, %126 : vector<2x16x16xf32>
    %129 = arith.addf %124, %128 : vector<2x16x16xf32>
    %c24 = arith.constant 24 : index
    %130 = memref.load %arg2[%c24] : memref<49xf32, #tpu.memory_space<smem>>
    %131 = vector.extract_strided_slice %114 {offsets = [0, 0, 3], sizes = [2, 16, 16], strides = [1, 1, 1]} : vector<2x16x22xf32> to vector<2x16x16xf32>
    %132 = vector.broadcast %130 : f32 to vector<2x16x16xf32>
    %133 = arith.mulf %132, %131 : vector<2x16x16xf32>
    %134 = arith.addf %129, %133 : vector<2x16x16xf32>
    %c25 = arith.constant 25 : index
    %135 = memref.load %arg2[%c25] : memref<49xf32, #tpu.memory_space<smem>>
    %136 = vector.extract_strided_slice %114 {offsets = [0, 0, 4], sizes = [2, 16, 16], strides = [1, 1, 1]} : vector<2x16x22xf32> to vector<2x16x16xf32>
    %137 = vector.broadcast %135 : f32 to vector<2x16x16xf32>
    %138 = arith.mulf %137, %136 : vector<2x16x16xf32>
    %139 = arith.addf %134, %138 : vector<2x16x16xf32>
    %c26 = arith.constant 26 : index
    %140 = memref.load %arg2[%c26] : memref<49xf32, #tpu.memory_space<smem>>
    %141 = vector.extract_strided_slice %114 {offsets = [0, 0, 5], sizes = [2, 16, 16], strides = [1, 1, 1]} : vector<2x16x22xf32> to vector<2x16x16xf32>
    %142 = vector.broadcast %140 : f32 to vector<2x16x16xf32>
    %143 = arith.mulf %142, %141 : vector<2x16x16xf32>
    %144 = arith.addf %139, %143 : vector<2x16x16xf32>
    %c27 = arith.constant 27 : index
    %145 = memref.load %arg2[%c27] : memref<49xf32, #tpu.memory_space<smem>>
    %146 = vector.extract_strided_slice %114 {offsets = [0, 0, 6], sizes = [2, 16, 16], strides = [1, 1, 1]} : vector<2x16x22xf32> to vector<2x16x16xf32>
    %147 = vector.broadcast %145 : f32 to vector<2x16x16xf32>
    %148 = arith.mulf %147, %146 : vector<2x16x16xf32>
    %149 = arith.addf %144, %148 : vector<2x16x16xf32>
    %c0_23 = arith.constant 0 : index
    %c4_24 = arith.constant 4 : index
    %c0_25 = arith.constant 0 : index
    %150 = vector.load %arg4[%c0_23, %c4_24, %c0_25] : memref<2x22x22xf32, #tpu.memory_space<vmem>>, vector<2x16x22xf32>
    %c28 = arith.constant 28 : index
    %151 = memref.load %arg2[%c28] : memref<49xf32, #tpu.memory_space<smem>>
    %152 = vector.extract_strided_slice %150 {offsets = [0, 0, 0], sizes = [2, 16, 16], strides = [1, 1, 1]} : vector<2x16x22xf32> to vector<2x16x16xf32>
    %153 = vector.broadcast %151 : f32 to vector<2x16x16xf32>
    %154 = arith.mulf %153, %152 : vector<2x16x16xf32>
    %155 = arith.addf %113, %154 : vector<2x16x16xf32>
    %c29 = arith.constant 29 : index
    %156 = memref.load %arg2[%c29] : memref<49xf32, #tpu.memory_space<smem>>
    %157 = vector.extract_strided_slice %150 {offsets = [0, 0, 1], sizes = [2, 16, 16], strides = [1, 1, 1]} : vector<2x16x22xf32> to vector<2x16x16xf32>
    %158 = vector.broadcast %156 : f32 to vector<2x16x16xf32>
    %159 = arith.mulf %158, %157 : vector<2x16x16xf32>
    %160 = arith.addf %155, %159 : vector<2x16x16xf32>
    %c30 = arith.constant 30 : index
    %161 = memref.load %arg2[%c30] : memref<49xf32, #tpu.memory_space<smem>>
    %162 = vector.extract_strided_slice %150 {offsets = [0, 0, 2], sizes = [2, 16, 16], strides = [1, 1, 1]} : vector<2x16x22xf32> to vector<2x16x16xf32>
    %163 = vector.broadcast %161 : f32 to vector<2x16x16xf32>
    %164 = arith.mulf %163, %162 : vector<2x16x16xf32>
    %165 = arith.addf %160, %164 : vector<2x16x16xf32>
    %c31 = arith.constant 31 : index
    %166 = memref.load %arg2[%c31] : memref<49xf32, #tpu.memory_space<smem>>
    %167 = vector.extract_strided_slice %150 {offsets = [0, 0, 3], sizes = [2, 16, 16], strides = [1, 1, 1]} : vector<2x16x22xf32> to vector<2x16x16xf32>
    %168 = vector.broadcast %166 : f32 to vector<2x16x16xf32>
    %169 = arith.mulf %168, %167 : vector<2x16x16xf32>
    %170 = arith.addf %165, %169 : vector<2x16x16xf32>
    %c32 = arith.constant 32 : index
    %171 = memref.load %arg2[%c32] : memref<49xf32, #tpu.memory_space<smem>>
    %172 = vector.extract_strided_slice %150 {offsets = [0, 0, 4], sizes = [2, 16, 16], strides = [1, 1, 1]} : vector<2x16x22xf32> to vector<2x16x16xf32>
    %173 = vector.broadcast %171 : f32 to vector<2x16x16xf32>
    %174 = arith.mulf %173, %172 : vector<2x16x16xf32>
    %175 = arith.addf %170, %174 : vector<2x16x16xf32>
    %c33 = arith.constant 33 : index
    %176 = memref.load %arg2[%c33] : memref<49xf32, #tpu.memory_space<smem>>
    %177 = vector.extract_strided_slice %150 {offsets = [0, 0, 5], sizes = [2, 16, 16], strides = [1, 1, 1]} : vector<2x16x22xf32> to vector<2x16x16xf32>
    %178 = vector.broadcast %176 : f32 to vector<2x16x16xf32>
    %179 = arith.mulf %178, %177 : vector<2x16x16xf32>
    %180 = arith.addf %175, %179 : vector<2x16x16xf32>
    %c34 = arith.constant 34 : index
    %181 = memref.load %arg2[%c34] : memref<49xf32, #tpu.memory_space<smem>>
    %182 = vector.extract_strided_slice %150 {offsets = [0, 0, 6], sizes = [2, 16, 16], strides = [1, 1, 1]} : vector<2x16x22xf32> to vector<2x16x16xf32>
    %183 = vector.broadcast %181 : f32 to vector<2x16x16xf32>
    %184 = arith.mulf %183, %182 : vector<2x16x16xf32>
    %185 = arith.addf %180, %184 : vector<2x16x16xf32>
    %c0_26 = arith.constant 0 : index
    %c5_27 = arith.constant 5 : index
    %c0_28 = arith.constant 0 : index
    %186 = vector.load %arg4[%c0_26, %c5_27, %c0_28] : memref<2x22x22xf32, #tpu.memory_space<vmem>>, vector<2x16x22xf32>
    %c35 = arith.constant 35 : index
    %187 = memref.load %arg2[%c35] : memref<49xf32, #tpu.memory_space<smem>>
    %188 = vector.extract_strided_slice %186 {offsets = [0, 0, 0], sizes = [2, 16, 16], strides = [1, 1, 1]} : vector<2x16x22xf32> to vector<2x16x16xf32>
    %189 = vector.broadcast %187 : f32 to vector<2x16x16xf32>
    %190 = arith.mulf %189, %188 : vector<2x16x16xf32>
    %191 = arith.addf %149, %190 : vector<2x16x16xf32>
    %c36 = arith.constant 36 : index
    %192 = memref.load %arg2[%c36] : memref<49xf32, #tpu.memory_space<smem>>
    %193 = vector.extract_strided_slice %186 {offsets = [0, 0, 1], sizes = [2, 16, 16], strides = [1, 1, 1]} : vector<2x16x22xf32> to vector<2x16x16xf32>
    %194 = vector.broadcast %192 : f32 to vector<2x16x16xf32>
    %195 = arith.mulf %194, %193 : vector<2x16x16xf32>
    %196 = arith.addf %191, %195 : vector<2x16x16xf32>
    %c37 = arith.constant 37 : index
    %197 = memref.load %arg2[%c37] : memref<49xf32, #tpu.memory_space<smem>>
    %198 = vector.extract_strided_slice %186 {offsets = [0, 0, 2], sizes = [2, 16, 16], strides = [1, 1, 1]} : vector<2x16x22xf32> to vector<2x16x16xf32>
    %199 = vector.broadcast %197 : f32 to vector<2x16x16xf32>
    %200 = arith.mulf %199, %198 : vector<2x16x16xf32>
    %201 = arith.addf %196, %200 : vector<2x16x16xf32>
    %c38 = arith.constant 38 : index
    %202 = memref.load %arg2[%c38] : memref<49xf32, #tpu.memory_space<smem>>
    %203 = vector.extract_strided_slice %186 {offsets = [0, 0, 3], sizes = [2, 16, 16], strides = [1, 1, 1]} : vector<2x16x22xf32> to vector<2x16x16xf32>
    %204 = vector.broadcast %202 : f32 to vector<2x16x16xf32>
    %205 = arith.mulf %204, %203 : vector<2x16x16xf32>
    %206 = arith.addf %201, %205 : vector<2x16x16xf32>
    %c39 = arith.constant 39 : index
    %207 = memref.load %arg2[%c39] : memref<49xf32, #tpu.memory_space<smem>>
    %208 = vector.extract_strided_slice %186 {offsets = [0, 0, 4], sizes = [2, 16, 16], strides = [1, 1, 1]} : vector<2x16x22xf32> to vector<2x16x16xf32>
    %209 = vector.broadcast %207 : f32 to vector<2x16x16xf32>
    %210 = arith.mulf %209, %208 : vector<2x16x16xf32>
    %211 = arith.addf %206, %210 : vector<2x16x16xf32>
    %c40 = arith.constant 40 : index
    %212 = memref.load %arg2[%c40] : memref<49xf32, #tpu.memory_space<smem>>
    %213 = vector.extract_strided_slice %186 {offsets = [0, 0, 5], sizes = [2, 16, 16], strides = [1, 1, 1]} : vector<2x16x22xf32> to vector<2x16x16xf32>
    %214 = vector.broadcast %212 : f32 to vector<2x16x16xf32>
    %215 = arith.mulf %214, %213 : vector<2x16x16xf32>
    %216 = arith.addf %211, %215 : vector<2x16x16xf32>
    %c41 = arith.constant 41 : index
    %217 = memref.load %arg2[%c41] : memref<49xf32, #tpu.memory_space<smem>>
    %218 = vector.extract_strided_slice %186 {offsets = [0, 0, 6], sizes = [2, 16, 16], strides = [1, 1, 1]} : vector<2x16x22xf32> to vector<2x16x16xf32>
    %219 = vector.broadcast %217 : f32 to vector<2x16x16xf32>
    %220 = arith.mulf %219, %218 : vector<2x16x16xf32>
    %221 = arith.addf %216, %220 : vector<2x16x16xf32>
    %c0_29 = arith.constant 0 : index
    %c6_30 = arith.constant 6 : index
    %c0_31 = arith.constant 0 : index
    %222 = vector.load %arg4[%c0_29, %c6_30, %c0_31] : memref<2x22x22xf32, #tpu.memory_space<vmem>>, vector<2x16x22xf32>
    %c42 = arith.constant 42 : index
    %223 = memref.load %arg2[%c42] : memref<49xf32, #tpu.memory_space<smem>>
    %224 = vector.extract_strided_slice %222 {offsets = [0, 0, 0], sizes = [2, 16, 16], strides = [1, 1, 1]} : vector<2x16x22xf32> to vector<2x16x16xf32>
    %225 = vector.broadcast %223 : f32 to vector<2x16x16xf32>
    %226 = arith.mulf %225, %224 : vector<2x16x16xf32>
    %227 = arith.addf %185, %226 : vector<2x16x16xf32>
    %c43 = arith.constant 43 : index
    %228 = memref.load %arg2[%c43] : memref<49xf32, #tpu.memory_space<smem>>
    %229 = vector.extract_strided_slice %222 {offsets = [0, 0, 1], sizes = [2, 16, 16], strides = [1, 1, 1]} : vector<2x16x22xf32> to vector<2x16x16xf32>
    %230 = vector.broadcast %228 : f32 to vector<2x16x16xf32>
    %231 = arith.mulf %230, %229 : vector<2x16x16xf32>
    %232 = arith.addf %227, %231 : vector<2x16x16xf32>
    %c44 = arith.constant 44 : index
    %233 = memref.load %arg2[%c44] : memref<49xf32, #tpu.memory_space<smem>>
    %234 = vector.extract_strided_slice %222 {offsets = [0, 0, 2], sizes = [2, 16, 16], strides = [1, 1, 1]} : vector<2x16x22xf32> to vector<2x16x16xf32>
    %235 = vector.broadcast %233 : f32 to vector<2x16x16xf32>
    %236 = arith.mulf %235, %234 : vector<2x16x16xf32>
    %237 = arith.addf %232, %236 : vector<2x16x16xf32>
    %c45 = arith.constant 45 : index
    %238 = memref.load %arg2[%c45] : memref<49xf32, #tpu.memory_space<smem>>
    %239 = vector.extract_strided_slice %222 {offsets = [0, 0, 3], sizes = [2, 16, 16], strides = [1, 1, 1]} : vector<2x16x22xf32> to vector<2x16x16xf32>
    %240 = vector.broadcast %238 : f32 to vector<2x16x16xf32>
    %241 = arith.mulf %240, %239 : vector<2x16x16xf32>
    %242 = arith.addf %237, %241 : vector<2x16x16xf32>
    %c46 = arith.constant 46 : index
    %243 = memref.load %arg2[%c46] : memref<49xf32, #tpu.memory_space<smem>>
    %244 = vector.extract_strided_slice %222 {offsets = [0, 0, 4], sizes = [2, 16, 16], strides = [1, 1, 1]} : vector<2x16x22xf32> to vector<2x16x16xf32>
    %245 = vector.broadcast %243 : f32 to vector<2x16x16xf32>
    %246 = arith.mulf %245, %244 : vector<2x16x16xf32>
    %247 = arith.addf %242, %246 : vector<2x16x16xf32>
    %c47 = arith.constant 47 : index
    %248 = memref.load %arg2[%c47] : memref<49xf32, #tpu.memory_space<smem>>
    %249 = vector.extract_strided_slice %222 {offsets = [0, 0, 5], sizes = [2, 16, 16], strides = [1, 1, 1]} : vector<2x16x22xf32> to vector<2x16x16xf32>
    %250 = vector.broadcast %248 : f32 to vector<2x16x16xf32>
    %251 = arith.mulf %250, %249 : vector<2x16x16xf32>
    %252 = arith.addf %247, %251 : vector<2x16x16xf32>
    %c48 = arith.constant 48 : index
    %253 = memref.load %arg2[%c48] : memref<49xf32, #tpu.memory_space<smem>>
    %254 = vector.extract_strided_slice %222 {offsets = [0, 0, 6], sizes = [2, 16, 16], strides = [1, 1, 1]} : vector<2x16x22xf32> to vector<2x16x16xf32>
    %255 = vector.broadcast %253 : f32 to vector<2x16x16xf32>
    %256 = arith.mulf %255, %254 : vector<2x16x16xf32>
    %257 = arith.addf %252, %256 : vector<2x16x16xf32>
    %258 = arith.addf %257, %221 : vector<2x16x16xf32>
    %259 = arith.negf %258 : vector<2x16x16xf32>
    %260 = math.exp %259 : vector<2x16x16xf32>
    %cst_32 = arith.constant 1.000000e+00 : f32
    %261 = vector.broadcast %cst_32 : f32 to vector<2x16x16xf32>
    %262 = arith.addf %261, %260 : vector<2x16x16xf32>
    %263 = arith.divf %261, %262 : vector<2x16x16xf32>
    %c0_33 = arith.constant 0 : index
    %c0_34 = arith.constant 0 : index
    %c0_35 = arith.constant 0 : index
    %264 = vector.load %arg3[%c0_33, %c0_34, %c0_35] : memref<2x16x16xf32, #tpu.memory_space<vmem>>, vector<2x16x16xf32>
    tpu.vector_store %arg3[%c0_33, %c0_34, %c0_35], %263 {strides = array<i32>} : memref<2x16x16xf32, #tpu.memory_space<vmem>>, vector<2x16x16xf32>,
    return
  }
  func.func @transform_0(%arg0: i32) -> (i32, i32, i32) {
    %c0_i32 = arith.constant 0 : i32
    %c0_i32_0 = arith.constant 0 : i32
    %c0_i32_1 = arith.constant 0 : i32
    return %arg0, %c0_i32, %c0_i32_0 : i32, i32, i32
  }
  func.func @transform_1(%arg0: i32) -> i32 {
    %c0_i32 = arith.constant 0 : i32
    %c0_i32_0 = arith.constant 0 : i32
    return %c0_i32 : i32
  }
  func.func @transform_2(%arg0: i32) -> (i32, i32, i32) {
    %c0_i32 = arith.constant 0 : i32
    %c0_i32_0 = arith.constant 0 : i32
    %c0_i32_1 = arith.constant 0 : i32
    return %arg0, %c0_i32, %c0_i32_0 : i32, i32, i32
  }
}

</mosaic_0001>

<bundles_post_ra>
// kernel: tpu_custom_call.1
= control target key start
LH: loop header
LB: loop body
LE: loop exit
PB: predicated region body
PF: predicated region fallthrough
CT: control target
= control target key end

     0   :  { %7 = vsyncpa [#allocation4], 0  ;;  %s2045_s0 = inlined_call_operand.hbm [shape: f32[2,16,16], index: 0, kind: input, shape index: {}]   ;;  %s2046_s1 = inlined_call_operand.vmem [shape: f32[49], index: 1, kind: input, shape index: {}]   ;;  %s2047_s2 = inlined_call_operand.hbm [shape: f32[2,16,16], index: 2, kind: output, shape index: {}]  }
   0x1   :  { %8 = vsyncpa [#allocation6], 0 }
   0x2   :  { %9 = vsyncpa [#allocation5], 0  ;;  %s1456_s9 = smov [#allocation3]   ;;  %s28_s13 = sshll.u32 %s2046_s1, 4  ;;  %s29_s13 = int_to_ptr.vmem [resolvable:$true] %s28_s13 }
   0x3   :  { %s15_s10 = sshll.u32 %s1456_s9, 4  ;;  %s1394_s16 = scalar_lea.hbm %s2045_s0, 512  ;;  %s16_s10 = int_to_ptr.vmem [resolvable:$true] %s15_s10 }
   0x4   :  { %p1395_p0 = scmp.ne.s32.totalorder %s2045_s0, %s1394_s16  ;;  %p1398_p1 = scmp.lt.u32.totalorder %s1394_s16, %s2045_s0 }
   0x6   :  { %p1400_p2 = pnand %p1398_p1, %p1395_p0 }
   0x8   :  { %1403 = shalt.err (!%p1400_p2)
}
   0x9   :  { %s1404_s21 = scalar_lea.vmem %s16_s10, 512  ;;  %p1409_p4 = scmp.lt.s32.totalorder %s16_s10, %s16_s10 }
   0xa   :  { %p1405_p3 = scmp.ne.s32.totalorder %s16_s10, %s1404_s21  ;;  %p1410_p5 = scmp.lt.s32.totalorder %s1404_s21, %s1404_s21 }
   0xc   :  { %p1411_p6 = por %p1410_p5, %p1409_p4 }
   0xe   :  { %p1412_p7 = pnand %p1411_p6, %p1405_p3 }
  0x10   :  { %1415 = shalt.err (!%p1412_p7)
}
  0x11   :  { %s1457_s1 = smov 128   ;;  %s1458_s22 = smov 8  }
  0x12   :  { %21 = dma.hbm_to_vmem [thread:$0]  %s2045_s0, 512, %s16_s10, [#allocation4], %s1457_s1, %s1457_s1, %s1458_s22  }
  0x13   :  { %s1416_s25 = scalar_lea.vmem %s29_s13, 16  ;;  %p1421_p9 = scmp.lt.s32.totalorder %s29_s13, %s29_s13 }
  0x14   :  { %p1417_p8 = scmp.ne.s32.totalorder %s29_s13, %s1416_s25  ;;  %p1422_p10 = scmp.lt.s32.totalorder %s1416_s25, %s1416_s25 }
  0x16   :  { %p1423_p11 = por %p1422_p10, %p1421_p9 }
  0x18   :  { %p1424_p12 = pnand %p1423_p11, %p1417_p8 }
  0x1a   :  { %1427 = shalt.err (!%p1424_p12)
}
  0x1b   :  { %s1459_s26 = smov [#allocation7]  }
  0x1c   :  { %31 = dma.vmem_to_smem %s29_s13, 16, %s1459_s26, [#allocation6]  }
  0x1d   :  { %1450 = dma.done.wait [#allocation4], 512  }
  0x1e   :  { %1451 = vsyncadd [#allocation4], 4294966784 }
  0x1f   :  { %1452 = dma.done.wait [#allocation6], 16  }
  0x20   :  { %1453 = vsyncadd [#allocation6], 4294967280 }
  0x21   :  { %38 = sfence }
  0x22   :  { %v49_v0 = vld [vmem:[#allocation3 + $0x10] sm:$0xff]  ;;  %v47_v1 = vld [vmem:[#allocation3] sm:$0xff]  ;;  %vm39_vm0 = vcmask 179200   ;;  %s1460_s27 = smov 3   ;;  %vm42_vm1 = vcmask 177152   ;;  %v50_v2 = vld [vmem:[#allocation3 + $0x18] sm:$0xff] }
  0x23   :  { %59 = vrot.lane.b32.xlu1 %v49_v0, %s1460_s27  ;;  %55 = vrot.lane.b32.xlu0 %v47_v1, %s1460_s27  ;;  %v48_v3 = vld [vmem:[#allocation3 + $0x8] sm:$0xff]  ;;  %v1461_v4 = vmov 0.0   ;;  %vm67_vm2 = vcmask 154648   ;;  %s1313_s0 = sld [smem:[#allocation7 + $0x1]]  ;;  %s1314_s28 = sld [smem:[#allocation7 + $0x2]]  ;;  %vm1290_vm3 = vcmask 130048  }
  0x24   :  { %44 = vst.msk [vmem:[#allocation2 + $0x18] sm:$0xff] %vm39_vm0, %v1461_v4  ;;  %45 = vst.msk [vmem:[#allocation2 + $0x20] sm:$0xff] %vm39_vm0, %v1461_v4  ;;  %s1462_s29 = smov 127   ;;  %s1315_s30 = sld [smem:[#allocation7 + $0x3]] }
  0x25   :  { %40 = vst.msk [vmem:[#allocation2] sm:$0xff] %vm39_vm0, %v1461_v4  ;;  %41 = vst.msk [vmem:[#allocation2 + $0x8] sm:$0xff] %vm39_vm0, %v1461_v4  ;;  %s1463_s3 = smov 126   ;;  %s1316_s4 = sld [smem:[#allocation7 + $0x4]] }
  0x26   :  { %46 = vst.msk [vmem:[#allocation2 + $0x28] sm:$0x3f] %vm42_vm1, %v1461_v4  ;;  %43 = vst.msk [vmem:[#allocation2 + $0x10] sm:$0x3f] %vm42_vm1, %v1461_v4  ;;  %s1464_s5 = smov 125   ;;  %s1317_s6 = sld [smem:[#allocation7 + $0x5]] }
  0x27   :  { %61 = vrot.lane.b32.xlu1 %v50_v2, %s1460_s27  ;;  %57 = vrot.lane.b32.xlu0 %v48_v3, %s1460_s27  ;;  %s1465_s7 = smov 124   ;;  %s1318_s8 = sld [smem:[#allocation7 + $0x6]] }
  0x28   :  { %s1466_s9 = smov 123   ;;  %s1320_s10 = sld [smem:[#allocation7 + $0x8]] }
  0x29   :  { %v87_v9 = vstv %s1313_s0  ;;  %v113_v17 = vstv %s1314_s28  ;;  %s1467_s11 = smov 122   ;;  %s1321_s12 = sld [smem:[#allocation7 + $0x9]] }
  0x2a   :  { %v139_v22 = vstv %s1315_s30  ;;  %s1322_s13 = sld [smem:[#allocation7 + $0xa]]  ;;  %s1323_s14 = sld [smem:[#allocation7 + $0xb]] }
  0x2b   :  { %v165_v27 = vstv %s1316_s4  ;;  %s1324_s15 = sld [smem:[#allocation7 + $0xc]]  ;;  %s1325_s16 = sld [smem:[#allocation7 + $0xd]] }
  0x2c   :  { %v191_v32 = vstv %s1317_s6  ;;  %s1327_s17 = sld [smem:[#allocation7 + $0xf]]  ;;  %s1328_s18 = sld [smem:[#allocation7 + $0x10]] }
  0x2d   :  { %v217_v37 = vstv %s1318_s8  ;;  %s1329_s19 = sld [smem:[#allocation7 + $0x11]]  ;;  %s1330_s20 = sld [smem:[#allocation7 + $0x12]] }
  0x2e   :  { %v257_v43 = vstv %s1320_s10  ;;  %s1331_s21 = sld [smem:[#allocation7 + $0x13]]  ;;  %s1332_s23 = sld [smem:[#allocation7 + $0x14]] }
  0x2f   :  { %v283_v51 = vstv %s1321_s12  ;;  %s1334_s24 = sld [smem:[#allocation7 + $0x16]]  ;;  %s76_s25 = sld [smem:[#allocation7]] }
  0x30   :  { %v309_v56 = vstv %s1322_s13  ;;  %v335_v61 = vstv %s1323_s14  ;;  %s1335_s26 = sld [smem:[#allocation7 + $0x17]]  ;;  %s1326_s27 = sld [smem:[#allocation7 + $0xe]] }
  0x31   :  { %v361_v2 = vstv %s1324_s15  ;;  %s1336_s0 = sld [smem:[#allocation7 + $0x18]]  ;;  %s1337_s28 = sld [smem:[#allocation7 + $0x19]] }
  0x32   :  { %s1338_s30 = sld [smem:[#allocation7 + $0x1a]]  ;;  %s1339_s4 = sld [smem:[#allocation7 + $0x1b]] }
  0x33   :  { %s1341_s6 = sld [smem:[#allocation7 + $0x1d]]  ;;  %s1319_s8 = sld [smem:[#allocation7 + $0x7]] }
  0x34   :  { %s1342_s10 = sld [smem:[#allocation7 + $0x1e]]  ;;  %s1333_s12 = sld [smem:[#allocation7 + $0x15]] }
  0x35   :  { %s1343_s13 = sld [smem:[#allocation7 + $0x1f]]  ;;  %s1344_s14 = sld [smem:[#allocation7 + $0x20]] }
  0x36   :  { %s1345_s15 = sld [smem:[#allocation7 + $0x21]] }
  0x95   :  { %v60_v5 = vpop.permute.xlu1 %59  ;;  %v56_v6 = vpop.permute.xlu0 %55 }
  0x96   :  { %70 = vst.msk [vmem:[#allocation2 + $0x1b] sm:$0xff] %vm67_vm2, %v60_v5  ;;  %68 = vst.msk [vmem:[#allocation2 + $0x3] sm:$0xff] %vm67_vm2, %v56_v6 }
  0x99   :  { %v62_v7 = vpop.permute.xlu1 %61  ;;  %v58_v8 = vpop.permute.xlu0 %57 }
  0x9a   :  { %71 = vst.msk [vmem:[#allocation2 + $0x23] sm:$0xff] %vm67_vm2, %v62_v7  ;;  %69 = vst.msk [vmem:[#allocation2 + $0xb] sm:$0xff] %vm67_vm2, %v58_v8  ;;  %v387_v7 = vstv %s1325_s16  ;;  %s1346_s16 = sld [smem:[#allocation7 + $0x22]] }
  0x9d   :  { %v1502_v10 = vld [vmem:[#allocation2] sm:$0xff]  ;;  %v1504_v11 = vld [vmem:[#allocation2 + $0x18] sm:$0xff] }
  0x9e   :  { %v88_v12 = vmul.f32 %v87_v9, %v1502_v10  ;;  %v90_v13 = vmul.f32 %v87_v9, %v1504_v11  ;;  %v114_v19 = vmul.f32 %v113_v17, %v1502_v10  ;;  %v116_v21 = vmul.f32 %v113_v17, %v1504_v11  ;;  %v1554_v42 = vld [vmem:[#allocation2 + $0x1] sm:$0xff]  ;;  %v1562_v47 = vld [vmem:[#allocation2 + $0x19] sm:$0xff] }
  0x9f   :  { %v140_v24 = vmul.f32 %v139_v22, %v1502_v10  ;;  %v142_v26 = vmul.f32 %v139_v22, %v1504_v11  ;;  %v166_v29 = vmul.f32 %v165_v27, %v1502_v10  ;;  %v168_v31 = vmul.f32 %v165_v27, %v1504_v11 }
  0xa0   :  { %96 = vrot.lane.b32.xlu0 %v88_v12, %s1462_s29  ;;  %v192_v34 = vmul.f32 %v191_v32, %v1502_v10  ;;  %v194_v36 = vmul.f32 %v191_v32, %v1504_v11  ;;  %v218_v39 = vmul.f32 %v217_v37, %v1502_v10  ;;  %v220_v41 = vmul.f32 %v217_v37, %v1504_v11 }
  0xa1   :  { %v1509_v14 = vld [vmem:[#allocation2 + $0x8] sm:$0xff]  ;;  %v1512_v16 = vld [vmem:[#allocation2 + $0x20] sm:$0xff]  ;;  %v258_v45 = vmul.f32 %v257_v43, %v1554_v42  ;;  %v260_v49 = vmul.f32 %v257_v43, %v1562_v47  ;;  %v284_v53 = vmul.f32 %v283_v51, %v1554_v42  ;;  %v286_v55 = vmul.f32 %v283_v51, %v1562_v47 }
  0xa2   :  { %v89_v15 = vmul.f32 %v87_v9, %v1509_v14  ;;  %v91_v18 = vmul.f32 %v87_v9, %v1512_v16  ;;  %v115_v20 = vmul.f32 %v113_v17, %v1509_v14  ;;  %v117_v23 = vmul.f32 %v113_v17, %v1512_v16  ;;  %v1560_v46 = vld [vmem:[#allocation2 + $0x9] sm:$0xff]  ;;  %v1568_v50 = vld [vmem:[#allocation2 + $0x21] sm:$0xff] }
  0xa3   :  { %v141_v25 = vmul.f32 %v139_v22, %v1509_v14  ;;  %v143_v28 = vmul.f32 %v139_v22, %v1512_v16  ;;  %v167_v30 = vmul.f32 %v165_v27, %v1509_v14  ;;  %v169_v33 = vmul.f32 %v165_v27, %v1512_v16 }
  0xa4   :  { %98 = vrot.lane.b32.xlu1 %v89_v15, %s1462_s29  ;;  %100 = vrot.lane.b32.xlu0 %v90_v13, %s1462_s29  ;;  %v193_v35 = vmul.f32 %v191_v32, %v1509_v14  ;;  %v195_v38 = vmul.f32 %v191_v32, %v1512_v16  ;;  %v219_v40 = vmul.f32 %v217_v37, %v1509_v14  ;;  %v1610_v15 = vld [vmem:[#allocation2 + $0x2] sm:$0xff]  ;;  %v427_v17 = vstv %s1327_s17  ;;  %s1348_s17 = sld [smem:[#allocation7 + $0x24]] }
  0xa5   :  { %v221_v44 = vmul.f32 %v217_v37, %v1512_v16  ;;  %v259_v48 = vmul.f32 %v257_v43, %v1560_v46  ;;  %v261_v52 = vmul.f32 %v257_v43, %v1568_v50  ;;  %v285_v54 = vmul.f32 %v283_v51, %v1560_v46 }
  0xa6   :  { %v287_v57 = vmul.f32 %v283_v51, %v1568_v50  ;;  %v310_v58 = vmul.f32 %v309_v56, %v1554_v42  ;;  %v311_v59 = vmul.f32 %v309_v56, %v1560_v46  ;;  %v312_v60 = vmul.f32 %v309_v56, %v1562_v47 }
  0xa7   :  { %v313_v62 = vmul.f32 %v309_v56, %v1568_v50  ;;  %v336_v63 = vmul.f32 %v335_v61, %v1554_v42  ;;  %v337_v0 = vmul.f32 %v335_v61, %v1560_v46  ;;  %v338_v1 = vmul.f32 %v335_v61, %v1562_v47 }
  0xa8   :  { %102 = vrot.lane.b32.xlu1 %v91_v18, %s1462_s29  ;;  %122 = vrot.lane.b32.xlu0 %v114_v19, %s1463_s3  ;;  %v339_v3 = vmul.f32 %v335_v61, %v1568_v50  ;;  %v362_v4 = vmul.f32 %v361_v2, %v1554_v42  ;;  %v363_v5 = vmul.f32 %v361_v2, %v1560_v46 }
  0xa9   :  { %v364_v6 = vmul.f32 %v361_v2, %v1562_v47  ;;  %v365_v8 = vmul.f32 %v361_v2, %v1568_v50  ;;  %v388_v9 = vmul.f32 %v387_v7, %v1554_v42  ;;  %v389_v12 = vmul.f32 %v387_v7, %v1560_v46 }
  0xaa   :  { %v390_v13 = vmul.f32 %v387_v7, %v1562_v47  ;;  %v391_v18 = vmul.f32 %v387_v7, %v1568_v50  ;;  %v428_v19 = vmul.f32 %v427_v17, %v1610_v15 }
  0xac   :  { %124 = vrot.lane.b32.xlu1 %v115_v20, %s1463_s3  ;;  %126 = vrot.lane.b32.xlu0 %v116_v21, %s1463_s3  ;;  %v1616_v20 = vld [vmem:[#allocation2 + $0xa] sm:$0xff]  ;;  %v1618_v21 = vld [vmem:[#allocation2 + $0x1a] sm:$0xff] }
  0xad   :  { %v429_v22 = vmul.f32 %v427_v17, %v1616_v20 }
  0xb0   :  { %128 = vrot.lane.b32.xlu1 %v117_v23, %s1463_s3  ;;  %148 = vrot.lane.b32.xlu0 %v140_v24, %s1464_s5  ;;  %v430_v23 = vmul.f32 %v427_v17, %v1618_v21  ;;  %v1624_v24 = vld [vmem:[#allocation2 + $0x22] sm:$0xff] }
  0xb4   :  { %150 = vrot.lane.b32.xlu1 %v141_v25, %s1464_s5  ;;  %152 = vrot.lane.b32.xlu0 %v142_v26, %s1464_s5  ;;  %v453_v25 = vstv %s1328_s18  ;;  %v431_v26 = vmul.f32 %v427_v17, %v1624_v24  ;;  %v1689_v17 = vld [vmem:[#allocation2 + $0x1b] sm:$0xff]  ;;  %s1355_s18 = sld [smem:[#allocation7 + $0x2b]] }
  0xb5   :  { %v454_v27 = vmul.f32 %v453_v25, %v1610_v15 }
  0xb8   :  { %154 = vrot.lane.b32.xlu1 %v143_v28, %s1464_s5  ;;  %174 = vrot.lane.b32.xlu0 %v166_v29, %s1465_s7  ;;  %v455_v28 = vmul.f32 %v453_v25, %v1616_v20  ;;  %v456_v29 = vmul.f32 %v453_v25, %v1618_v21 }
  0xbc   :  { %176 = vrot.lane.b32.xlu1 %v167_v30, %s1465_s7  ;;  %178 = vrot.lane.b32.xlu0 %v168_v31, %s1465_s7  ;;  %v479_v30 = vstv %s1329_s19  ;;  %v457_v31 = vmul.f32 %v453_v25, %v1624_v24  ;;  %s1340_s19 = sld [smem:[#allocation7 + $0x1c]] }
  0xbd   :  { %v480_v32 = vmul.f32 %v479_v30, %v1610_v15 }
  0xc0   :  { %180 = vrot.lane.b32.xlu1 %v169_v33, %s1465_s7  ;;  %200 = vrot.lane.b32.xlu0 %v192_v34, %s1466_s9  ;;  %v481_v34 = vmul.f32 %v479_v30, %v1616_v20 }
  0xc4   :  { %202 = vrot.lane.b32.xlu1 %v193_v35, %s1466_s9  ;;  %204 = vrot.lane.b32.xlu0 %v194_v36, %s1466_s9  ;;  %v482_v35 = vmul.f32 %v479_v30, %v1618_v21  ;;  %v505_v36 = vstv %s1330_s20  ;;  %s1349_s20 = sld [smem:[#allocation7 + $0x25]] }
  0xc8   :  { %206 = vrot.lane.b32.xlu1 %v195_v38, %s1466_s9  ;;  %226 = vrot.lane.b32.xlu0 %v218_v39, %s1467_s11  ;;  %v483_v39 = vmul.f32 %v479_v30, %v1624_v24 }
  0xcc   :  { %228 = vrot.lane.b32.xlu1 %v219_v40, %s1467_s11  ;;  %230 = vrot.lane.b32.xlu0 %v220_v41, %s1467_s11  ;;  %v506_v40 = vmul.f32 %v505_v36, %v1610_v15 }
  0xd0   :  { %232 = vrot.lane.b32.xlu1 %v221_v44, %s1467_s11  ;;  %266 = vrot.lane.b32.xlu0 %v258_v45, %s1462_s29  ;;  %v507_v44 = vmul.f32 %v505_v36, %v1616_v20  ;;  %v508_v45 = vmul.f32 %v505_v36, %v1618_v21 }
  0xd4   :  { %268 = vrot.lane.b32.xlu1 %v259_v48, %s1462_s29  ;;  %270 = vrot.lane.b32.xlu0 %v260_v49, %s1462_s29  ;;  %v531_v48 = vstv %s1331_s21  ;;  %s1356_s21 = sld [smem:[#allocation7 + $0x2c]] }
  0xd5   :  { %v533_v56 = vmul.f32 %v531_v48, %v1616_v20  ;;  %v535_v61 = vmul.f32 %v531_v48, %v1624_v24 }
  0xd8   :  { %272 = vrot.lane.b32.xlu1 %v261_v52, %s1462_s29  ;;  %292 = vrot.lane.b32.xlu0 %v284_v53, %s1463_s3  ;;  %v509_v52 = vmul.f32 %v505_v36, %v1624_v24  ;;  %v532_v53 = vmul.f32 %v531_v48, %v1610_v15 }
  0xdc   :  { %294 = vrot.lane.b32.xlu1 %v285_v54, %s1463_s3  ;;  %296 = vrot.lane.b32.xlu0 %v286_v55, %s1463_s3 }
  0xe0   :  { %298 = vrot.lane.b32.xlu1 %v287_v57, %s1463_s3  ;;  %318 = vrot.lane.b32.xlu0 %v310_v58, %s1464_s5  ;;  %v534_v57 = vmul.f32 %v531_v48, %v1618_v21  ;;  %v557_v58 = vstv %s1332_s23  ;;  %s1350_s23 = sld [smem:[#allocation7 + $0x26]] }
  0xe1   :  { %v560_v2 = vmul.f32 %v557_v58, %v1618_v21 }
  0xe4   :  { %320 = vrot.lane.b32.xlu1 %v311_v59, %s1464_s5  ;;  %322 = vrot.lane.b32.xlu0 %v312_v60, %s1464_s5 }
  0xe8   :  { %324 = vrot.lane.b32.xlu1 %v313_v62, %s1464_s5  ;;  %344 = vrot.lane.b32.xlu0 %v336_v63, %s1465_s7  ;;  %v558_v62 = vmul.f32 %v557_v58, %v1610_v15 }
  0xec   :  { %346 = vrot.lane.b32.xlu1 %v337_v0, %s1465_s7  ;;  %348 = vrot.lane.b32.xlu0 %v338_v1, %s1465_s7  ;;  %v559_v1 = vmul.f32 %v557_v58, %v1616_v20 }
  0xf0   :  { %350 = vrot.lane.b32.xlu1 %v339_v3, %s1465_s7  ;;  %370 = vrot.lane.b32.xlu0 %v362_v4, %s1466_s9  ;;  %v1680_v3 = vld [vmem:[#allocation2 + $0x3] sm:$0xff]  ;;  %v597_v4 = vstv %s1334_s24  ;;  %s1351_s24 = sld [smem:[#allocation7 + $0x27]] }
  0xf1   :  { %v600_v25 = vmul.f32 %v597_v4, %v1689_v17 }
  0xf4   :  { %372 = vrot.lane.b32.xlu1 %v363_v5, %s1466_s9  ;;  %374 = vrot.lane.b32.xlu0 %v364_v6, %s1466_s9  ;;  %v77_v5 = vstv %s76_s25  ;;  %s1347_s25 = sld [smem:[#allocation7 + $0x23]] }
  0xf5   :  { %v81_v36 = vmul.f32 %v77_v5, %v1512_v16 }
  0xf8   :  { %376 = vrot.lane.b32.xlu1 %v365_v8, %s1466_s9  ;;  %396 = vrot.lane.b32.xlu0 %v388_v9, %s1467_s11  ;;  %v561_v8 = vmul.f32 %v557_v58, %v1624_v24  ;;  %v598_v9 = vmul.f32 %v597_v4, %v1680_v3 }
  0xfc   :  { %398 = vrot.lane.b32.xlu1 %v389_v12, %s1467_s11  ;;  %400 = vrot.lane.b32.xlu0 %v390_v13, %s1467_s11  ;;  %v78_v12 = vmul.f32 %v77_v5, %v1502_v10  ;;  %v1687_v13 = vld [vmem:[#allocation2 + $0xb] sm:$0xff]  ;;  %v80_v10 = vmul.f32 %v77_v5, %v1504_v11  ;;  %v417_v11 = vstv %s1326_s27  ;;  %s1353_s27 = sld [smem:[#allocation7 + $0x29]] }
 0x100   :  { %402 = vrot.lane.b32.xlu1 %v391_v18, %s1467_s11  ;;  %436 = vrot.lane.b32.xlu0 %v428_v19, %s1462_s29 }
 0x104   :  { %438 = vrot.lane.b32.xlu1 %v429_v22, %s1462_s29  ;;  %440 = vrot.lane.b32.xlu0 %v430_v23, %s1462_s29  ;;  %v599_v23 = vmul.f32 %v597_v4, %v1687_v13 }
 0x108   :  { %442 = vrot.lane.b32.xlu1 %v431_v26, %s1462_s29  ;;  %462 = vrot.lane.b32.xlu0 %v454_v27, %s1463_s3  ;;  %v79_v26 = vmul.f32 %v77_v5, %v1509_v14 }
 0x10c   :  { %464 = vrot.lane.b32.xlu1 %v455_v28, %s1463_s3  ;;  %466 = vrot.lane.b32.xlu0 %v456_v29, %s1463_s3  ;;  %v1697_v28 = vld [vmem:[#allocation2 + $0x23] sm:$0xff]  ;;  %v623_v29 = vstv %s1335_s26  ;;  %s1352_s26 = sld [smem:[#allocation7 + $0x28]] }
 0x10d   :  { %v624_v14 = vmul.f32 %v623_v29, %v1680_v3  ;;  %v626_v16 = vmul.f32 %v623_v29, %v1689_v17 }
 0x110   :  { %468 = vrot.lane.b32.xlu1 %v457_v31, %s1463_s3  ;;  %488 = vrot.lane.b32.xlu0 %v480_v32, %s1464_s5 }
 0x112   :  { %v97_v33 = vpop.permute.xlu0 %96 }
 0x113   :  { %v108_v18 = vadd.f32 %v97_v33, %v78_v12 }
 0x114   :  { %490 = vrot.lane.b32.xlu1 %v481_v34, %s1464_s5  ;;  %492 = vrot.lane.b32.xlu0 %v482_v35, %s1464_s5  ;;  %v601_v35 = vmul.f32 %v597_v4, %v1697_v28 }
 0x116   :  { %v1644_v37 = vpop.permute.xlu1 %98  ;;  %v1646_v38 = vpop.permute.xlu0 %100 }
 0x117   :  { %v109_v30 = vadd.f32 %v1644_v37, %v79_v26  ;;  %v110_v31 = vadd.f32 %v1646_v38, %v80_v10 }
 0x118   :  { %494 = vrot.lane.b32.xlu1 %v483_v39, %s1464_s5  ;;  %514 = vrot.lane.b32.xlu0 %v506_v40, %s1465_s7 }
 0x11a   :  { %v1652_v41 = vpop.permute.xlu1 %102  ;;  %v123_v43 = vpop.permute.xlu0 %122 }
 0x11b   :  { %v134_v27 = vadd.f32 %v123_v43, %v108_v18  ;;  %v111_v37 = vadd.f32 %v1652_v41, %v81_v36 }
 0x11c   :  { %516 = vrot.lane.b32.xlu1 %v507_v44, %s1465_s7  ;;  %518 = vrot.lane.b32.xlu0 %v508_v45, %s1465_s7 }
 0x11e   :  { %v1658_v49 = vpop.permute.xlu1 %124  ;;  %v1660_v51 = vpop.permute.xlu0 %126 }
 0x11f   :  { %v135_v39 = vadd.f32 %v1658_v49, %v109_v30  ;;  %v136_v40 = vadd.f32 %v1660_v51, %v110_v31  ;;  %v418_v49 = vmul.f32 %v417_v11, %v1610_v15  ;;  %v627_v15 = vmul.f32 %v623_v29, %v1697_v28 }
 0x120   :  { %520 = vrot.lane.b32.xlu1 %v509_v52, %s1465_s7  ;;  %540 = vrot.lane.b32.xlu0 %v532_v53, %s1466_s9  ;;  %v625_v53 = vmul.f32 %v623_v29, %v1687_v13 }
 0x122   :  { %v1666_v54 = vpop.permute.xlu1 %128  ;;  %v149_v55 = vpop.permute.xlu0 %148 }
 0x123   :  { %v160_v32 = vadd.f32 %v149_v55, %v134_v27  ;;  %v649_v55 = vstv %s1336_s0  ;;  %v137_v51 = vadd.f32 %v1666_v54, %v111_v37 }
 0x124   :  { %542 = vrot.lane.b32.xlu1 %v533_v56, %s1466_s9  ;;  %544 = vrot.lane.b32.xlu0 %v534_v57, %s1466_s9  ;;  %v650_v54 = vmul.f32 %v649_v55, %v1680_v3  ;;  %v651_v18 = vmul.f32 %v649_v55, %v1687_v13  ;;  %v653_v10 = vmul.f32 %v649_v55, %v1697_v28 }
 0x126   :  { %v151_v59 = vpop.permute.xlu1 %150  ;;  %v153_v60 = vpop.permute.xlu0 %152 }
 0x127   :  { %v161_v38 = vadd.f32 %v151_v59, %v135_v39  ;;  %v162_v44 = vadd.f32 %v153_v60, %v136_v40 }
 0x128   :  { %546 = vrot.lane.b32.xlu1 %v535_v61, %s1466_s9  ;;  %566 = vrot.lane.b32.xlu0 %v558_v62, %s1467_s11 }
 0x12a   :  { %v1676_v63 = vpop.permute.xlu1 %154  ;;  %v175_v0 = vpop.permute.xlu0 %174 }
 0x12b   :  { %v186_v43 = vadd.f32 %v175_v0, %v160_v32  ;;  %v163_v41 = vadd.f32 %v1676_v63, %v137_v51  ;;  %v701_v32 = vstv %s1338_s30  ;;  %v247_v51 = vstv %s1319_s8 }
 0x12c   :  { %568 = vrot.lane.b32.xlu1 %v559_v1, %s1467_s11  ;;  %570 = vrot.lane.b32.xlu0 %v560_v2, %s1467_s11  ;;  %v419_v1 = vmul.f32 %v417_v11, %v1616_v20  ;;  %v652_v20 = vmul.f32 %v649_v55, %v1689_v17  ;;  %v703_v39 = vmul.f32 %v701_v32, %v1687_v13  ;;  %v1775_v55 = vld [vmem:[#allocation2 + $0x4] sm:$0xff] }
 0x12d   :  { %v704_v40 = vmul.f32 %v701_v32, %v1689_v17 }
 0x12e   :  { %v177_v6 = vpop.permute.xlu1 %176  ;;  %v179_v7 = vpop.permute.xlu0 %178 }
 0x12f   :  { %v187_v56 = vadd.f32 %v177_v6, %v161_v38  ;;  %v188_v57 = vadd.f32 %v179_v7, %v162_v44  ;;  %v420_v6 = vmul.f32 %v417_v11, %v1618_v21  ;;  %v421_v21 = vmul.f32 %v417_v11, %v1624_v24 }
 0x130   :  { %572 = vrot.lane.b32.xlu1 %v561_v8, %s1467_s11  ;;  %606 = vrot.lane.b32.xlu0 %v598_v9, %s1462_s29  ;;  %v705_v44 = vmul.f32 %v701_v32, %v1697_v28 }
 0x132   :  { %v181_v19 = vpop.permute.xlu1 %180  ;;  %v201_v22 = vpop.permute.xlu0 %200 }
 0x133   :  { %v212_v45 = vadd.f32 %v201_v22, %v186_v43  ;;  %v189_v2 = vadd.f32 %v181_v19, %v163_v41  ;;  %v675_v22 = vstv %s1337_s28  ;;  %v727_v43 = vstv %s1339_s4 }
 0x134   :  { %608 = vrot.lane.b32.xlu1 %v599_v23, %s1462_s29  ;;  %610 = vrot.lane.b32.xlu0 %v600_v25, %s1462_s29  ;;  %v676_v27 = vmul.f32 %v675_v22, %v1680_v3  ;;  %v677_v30 = vmul.f32 %v675_v22, %v1687_v13  ;;  %v678_v31 = vmul.f32 %v675_v22, %v1689_v17 }
 0x136   :  { %v203_v33 = vpop.permute.xlu1 %202  ;;  %v205_v34 = vpop.permute.xlu0 %204 }
 0x137   :  { %v213_v59 = vadd.f32 %v203_v33, %v187_v56  ;;  %v214_v60 = vadd.f32 %v205_v34, %v188_v57 }
 0x138   :  { %612 = vrot.lane.b32.xlu1 %v601_v35, %s1462_s29  ;;  %632 = vrot.lane.b32.xlu0 %v624_v14, %s1463_s3  ;;  %v679_v35 = vmul.f32 %v675_v22, %v1697_v28  ;;  %v702_v14 = vmul.f32 %v701_v32, %v1680_v3 }
 0x13a   :  { %v207_v48 = vpop.permute.xlu1 %206  ;;  %v227_v52 = vpop.permute.xlu0 %226 }
 0x13b   :  { %v238_v58 = vadd.f32 %v227_v52, %v212_v45  ;;  %v215_v63 = vadd.f32 %v207_v48, %v189_v2  ;;  %v728_v45 = vmul.f32 %v727_v43, %v1680_v3 }
 0x13c   :  { %634 = vrot.lane.b32.xlu1 %v625_v53, %s1463_s3  ;;  %636 = vrot.lane.b32.xlu0 %v626_v16, %s1463_s3  ;;  %v729_v53 = vmul.f32 %v727_v43, %v1687_v13  ;;  %v730_v16 = vmul.f32 %v727_v43, %v1689_v17 }
 0x13d   :  { %v1718_v61 = vadd.f32 %v418_v49, %v238_v58  ;;  %v767_v49 = vstv %s1341_s6  ;;  %v731_v58 = vmul.f32 %v727_v43, %v1697_v28 }
 0x13e   :  { %v229_v62 = vpop.permute.xlu1 %228  ;;  %v231_v0 = vpop.permute.xlu0 %230  ;;  %v768_v41 = vmul.f32 %v767_v49, %v1775_v55 }
 0x13f   :  { %v239_v4 = vadd.f32 %v229_v62, %v213_v59  ;;  %v240_v5 = vadd.f32 %v231_v0, %v214_v60  ;;  %v248_v59 = vmul.f32 %v247_v51, %v1554_v42  ;;  %v1782_v60 = vld [vmem:[#allocation2 + $0xc] sm:$0xff]  ;;  %v1784_v62 = vld [vmem:[#allocation2 + $0x1c] sm:$0xff]  ;;  %v250_v42 = vmul.f32 %v247_v51, %v1562_v47 }
 0x140   :  { %638 = vrot.lane.b32.xlu1 %v627_v15, %s1463_s3  ;;  %658 = vrot.lane.b32.xlu0 %v650_v54, %s1464_s5  ;;  %v770_v2 = vmul.f32 %v767_v49, %v1784_v62  ;;  %v587_v47 = vstv %s1333_s12 }
 0x141   :  { %v1726_v7 = vadd.f32 %v419_v1, %v239_v4  ;;  %v1728_v8 = vadd.f32 %v420_v6, %v240_v5  ;;  %v769_v1 = vmul.f32 %v767_v49, %v1782_v60  ;;  %v249_v4 = vmul.f32 %v247_v51, %v1560_v46  ;;  %v1793_v6 = vld [vmem:[#allocation2 + $0x24] sm:$0xff] }
 0x142   :  { %v233_v9 = vpop.permute.xlu1 %232  ;;  %v1730_v12 = vpop.permute.xlu0 %266  ;;  %v771_v22 = vmul.f32 %v767_v49, %v1793_v6 }
 0x143   :  { %v241_v19 = vadd.f32 %v233_v9, %v215_v63  ;;  %v278_v0 = vadd.f32 %v1730_v12, %v248_v59  ;;  %v793_v63 = vstv %s1342_s10 }
 0x144   :  { %660 = vrot.lane.b32.xlu1 %v651_v18, %s1464_s5  ;;  %662 = vrot.lane.b32.xlu0 %v652_v20, %s1464_s5  ;;  %v794_v46 = vmul.f32 %v793_v63, %v1775_v55 }
 0x145   :  { %v1737_v23 = vadd.f32 %v421_v21, %v241_v19  ;;  %v251_v21 = vmul.f32 %v247_v51, %v1568_v50  ;;  %v796_v50 = vmul.f32 %v793_v63, %v1784_v62 }
 0x146   :  { %v1739_v25 = vpop.permute.xlu1 %268  ;;  %v1741_v26 = vpop.permute.xlu0 %270 }
 0x147   :  { %v279_v9 = vadd.f32 %v1739_v25, %v249_v4  ;;  %v280_v12 = vadd.f32 %v1741_v26, %v250_v42 }
 0x148   :  { %664 = vrot.lane.b32.xlu1 %v653_v10, %s1464_s5  ;;  %684 = vrot.lane.b32.xlu0 %v676_v27, %s1465_s7 }
 0x14a   :  { %v1747_v29 = vpop.permute.xlu1 %272  ;;  %v293_v24 = vpop.permute.xlu0 %292 }
 0x14b   :  { %v304_v5 = vadd.f32 %v293_v24, %v278_v0  ;;  %v281_v25 = vadd.f32 %v1747_v29, %v251_v21 }
 0x14c   :  { %686 = vrot.lane.b32.xlu1 %v677_v30, %s1465_s7  ;;  %688 = vrot.lane.b32.xlu0 %v678_v31, %s1465_s7 }
 0x14e   :  { %v1753_v33 = vpop.permute.xlu1 %294  ;;  %v1755_v34 = vpop.permute.xlu0 %296 }
 0x14f   :  { %v305_v10 = vadd.f32 %v1753_v33, %v279_v9  ;;  %v306_v27 = vadd.f32 %v1755_v34, %v280_v12  ;;  %v588_v33 = vmul.f32 %v587_v47, %v1680_v3  ;;  %v797_v3 = vmul.f32 %v793_v63, %v1793_v6 }
 0x150   :  { %690 = vrot.lane.b32.xlu1 %v679_v35, %s1465_s7  ;;  %710 = vrot.lane.b32.xlu0 %v702_v14, %s1466_s9  ;;  %v795_v14 = vmul.f32 %v793_v63, %v1782_v60 }
 0x152   :  { %v1761_v11 = vpop.permute.xlu1 %298  ;;  %v319_v36 = vpop.permute.xlu0 %318 }
 0x153   :  { %v330_v18 = vadd.f32 %v319_v36, %v304_v5  ;;  %v819_v36 = vstv %s1343_s13  ;;  %v307_v34 = vadd.f32 %v1761_v11, %v281_v25 }
 0x154   :  { %712 = vrot.lane.b32.xlu1 %v703_v39, %s1466_s9  ;;  %714 = vrot.lane.b32.xlu0 %v704_v40, %s1466_s9  ;;  %v820_v11 = vmul.f32 %v819_v36, %v1775_v55  ;;  %v821_v0 = vmul.f32 %v819_v36, %v1782_v60  ;;  %v823_v42 = vmul.f32 %v819_v36, %v1793_v6 }
 0x156   :  { %v321_v37 = vpop.permute.xlu1 %320  ;;  %v323_v38 = vpop.permute.xlu0 %322 }
 0x157   :  { %v331_v26 = vadd.f32 %v321_v37, %v305_v10  ;;  %v332_v30 = vadd.f32 %v323_v38, %v306_v27 }
 0x158   :  { %716 = vrot.lane.b32.xlu1 %v705_v44, %s1466_s9  ;;  %736 = vrot.lane.b32.xlu0 %v728_v45, %s1467_s11 }
 0x15a   :  { %v1771_v48 = vpop.permute.xlu1 %324  ;;  %v345_v52 = vpop.permute.xlu0 %344 }
 0x15b   :  { %v356_v24 = vadd.f32 %v345_v52, %v330_v18  ;;  %v333_v29 = vadd.f32 %v1771_v48, %v307_v34  ;;  %v871_v18 = vstv %s1345_s15 }
 0x15c   :  { %738 = vrot.lane.b32.xlu1 %v729_v53, %s1467_s11  ;;  %740 = vrot.lane.b32.xlu0 %v730_v16, %s1467_s11  ;;  %v589_v53 = vmul.f32 %v587_v47, %v1687_v13  ;;  %v822_v13 = vmul.f32 %v819_v36, %v1784_v62  ;;  %v873_v10 = vmul.f32 %v871_v18, %v1782_v60  ;;  %v1865_v36 = vld [vmem:[#allocation2 + $0x5] sm:$0xff] }
 0x15d   :  { %v874_v27 = vmul.f32 %v871_v18, %v1784_v62 }
 0x15e   :  { %v347_v56 = vpop.permute.xlu1 %346  ;;  %v349_v57 = vpop.permute.xlu0 %348 }
 0x15f   :  { %v357_v39 = vadd.f32 %v347_v56, %v331_v26  ;;  %v358_v40 = vadd.f32 %v349_v57, %v332_v30  ;;  %v590_v56 = vmul.f32 %v587_v47, %v1689_v17  ;;  %v591_v17 = vmul.f32 %v587_v47, %v1697_v28 }
 0x160   :  { %742 = vrot.lane.b32.xlu1 %v731_v58, %s1467_s11  ;;  %776 = vrot.lane.b32.xlu0 %v768_v41, %s1462_s29  ;;  %v875_v30 = vmul.f32 %v871_v18, %v1793_v6 }
 0x162   :  { %v351_v15 = vpop.permute.xlu1 %350  ;;  %v371_v54 = vpop.permute.xlu0 %370 }
 0x163   :  { %v382_v31 = vadd.f32 %v371_v54, %v356_v24  ;;  %v359_v16 = vadd.f32 %v351_v15, %v333_v29  ;;  %v845_v54 = vstv %s1344_s14  ;;  %v897_v24 = vstv %s1346_s16  ;;  %v1871_v29 = vld [vmem:[#allocation2 + $0xd] sm:$0xff] }
 0x164   :  { %778 = vrot.lane.b32.xlu1 %v769_v1, %s1462_s29  ;;  %780 = vrot.lane.b32.xlu0 %v770_v2, %s1462_s29  ;;  %v846_v5 = vmul.f32 %v845_v54, %v1775_v55  ;;  %v847_v9 = vmul.f32 %v845_v54, %v1782_v60  ;;  %v848_v12 = vmul.f32 %v845_v54, %v1784_v62 }
 0x166   :  { %v373_v20 = vpop.permute.xlu1 %372  ;;  %v375_v19 = vpop.permute.xlu0 %374 }
 0x167   :  { %v383_v37 = vadd.f32 %v373_v20, %v357_v39  ;;  %v384_v38 = vadd.f32 %v375_v19, %v358_v40  ;;  %v901_v40 = vmul.f32 %v897_v24, %v1793_v6 }
 0x168   :  { %782 = vrot.lane.b32.xlu1 %v771_v22, %s1462_s29  ;;  %802 = vrot.lane.b32.xlu0 %v794_v46, %s1463_s3  ;;  %v849_v22 = vmul.f32 %v845_v54, %v1793_v6  ;;  %v872_v46 = vmul.f32 %v871_v18, %v1775_v55 }
 0x16a   :  { %v377_v32 = vpop.permute.xlu1 %376  ;;  %v397_v35 = vpop.permute.xlu0 %396 }
 0x16b   :  { %v408_v43 = vadd.f32 %v397_v35, %v382_v31  ;;  %v385_v48 = vadd.f32 %v377_v32, %v359_v16  ;;  %v898_v31 = vmul.f32 %v897_v24, %v1775_v55  ;;  %v1880_v16 = vld [vmem:[#allocation2 + $0x25] sm:$0xff] }
 0x16c   :  { %804 = vrot.lane.b32.xlu1 %v795_v14, %s1463_s3  ;;  %806 = vrot.lane.b32.xlu0 %v796_v50, %s1463_s3  ;;  %v899_v14 = vmul.f32 %v897_v24, %v1782_v60  ;;  %v900_v50 = vmul.f32 %v897_v24, %v1784_v62  ;;  %v1904_v24 = vld [vmem:[#allocation2 + $0x26] sm:$0xff] }
 0x16d   :  { %v1814_v44 = vadd.f32 %v588_v33, %v408_v43  ;;  %v937_v33 = vstv %s1348_s17 }
 0x16e   :  { %v399_v45 = vpop.permute.xlu1 %398  ;;  %v401_v52 = vpop.permute.xlu0 %400  ;;  %v938_v43 = vmul.f32 %v937_v33, %v1865_v36 }
 0x16f   :  { %v409_v49 = vadd.f32 %v399_v45, %v383_v37  ;;  %v410_v51 = vadd.f32 %v401_v52, %v384_v38  ;;  %v1873_v37 = vld [vmem:[#allocation2 + $0x1d] sm:$0xff] }
 0x170   :  { %808 = vrot.lane.b32.xlu1 %v797_v3, %s1463_s3  ;;  %828 = vrot.lane.b32.xlu0 %v820_v11, %s1464_s5  ;;  %v939_v3 = vmul.f32 %v937_v33, %v1871_v29  ;;  %v940_v11 = vmul.f32 %v937_v33, %v1873_v37 }
 0x171   :  { %v1822_v57 = vadd.f32 %v589_v53, %v409_v49  ;;  %v1824_v58 = vadd.f32 %v590_v56, %v410_v51  ;;  %v1882_v49 = vld [vmem:[#allocation2 + $0x6] sm:$0xff]  ;;  %v1107_v51 = vstv %s1355_s18 }
 0x172   :  { %v403_v41 = vpop.permute.xlu1 %402  ;;  %v437_v59 = vpop.permute.xlu0 %436 }
 0x173   :  { %v411_v15 = vadd.f32 %v403_v41, %v385_v48  ;;  %v448_v38 = vadd.f32 %v437_v59, %v1718_v61 }
 0x174   :  { %830 = vrot.lane.b32.xlu1 %v821_v0, %s1464_s5  ;;  %832 = vrot.lane.b32.xlu0 %v822_v13, %s1464_s5  ;;  %v941_v0 = vmul.f32 %v937_v33, %v1880_v16  ;;  %v1108_v13 = vmul.f32 %v1107_v51, %v1882_v49 }
 0x175   :  { %v1831_v1 = vadd.f32 %v591_v17, %v411_v15 }
 0x176   :  { %v1833_v2 = vpop.permute.xlu1 %438  ;;  %v1835_v4 = vpop.permute.xlu0 %440 }
 0x177   :  { %v449_v61 = vadd.f32 %v1833_v2, %v1726_v7  ;;  %v450_v56 = vadd.f32 %v1835_v4, %v1728_v8 }
 0x178   :  { %834 = vrot.lane.b32.xlu1 %v823_v42, %s1464_s5  ;;  %854 = vrot.lane.b32.xlu0 %v846_v5, %s1465_s7  ;;  %v1892_v42 = vld [vmem:[#allocation2 + $0xe] sm:$0xff]  ;;  %v1894_v5 = vld [vmem:[#allocation2 + $0x1e] sm:$0xff] }
 0x179   :  { %v1109_v18 = vmul.f32 %v1107_v51, %v1892_v42 }
 0x17a   :  { %v1841_v63 = vpop.permute.xlu1 %442  ;;  %v463_v28 = vpop.permute.xlu0 %462 }
 0x17b   :  { %v474_v53 = vadd.f32 %v463_v28, %v448_v38  ;;  %v757_v28 = vstv %s1340_s19  ;;  %v451_v7 = vadd.f32 %v1841_v63, %v1737_v23 }
 0x17c   :  { %856 = vrot.lane.b32.xlu1 %v847_v9, %s1465_s7  ;;  %858 = vrot.lane.b32.xlu0 %v848_v12, %s1465_s7 }
 0x17e   :  { %v465_v20 = vpop.permute.xlu1 %464  ;;  %v467_v19 = vpop.permute.xlu0 %466 }
 0x17f   :  { %v475_v15 = vadd.f32 %v465_v20, %v449_v61  ;;  %v476_v54 = vadd.f32 %v467_v19, %v450_v56  ;;  %v1110_v20 = vmul.f32 %v1107_v51, %v1894_v5  ;;  %v963_v19 = vstv %s1349_s20 }
 0x180   :  { %860 = vrot.lane.b32.xlu1 %v849_v22, %s1465_s7  ;;  %880 = vrot.lane.b32.xlu0 %v872_v46, %s1466_s9  ;;  %v758_v22 = vmul.f32 %v757_v28, %v1775_v55  ;;  %v967_v56 = vmul.f32 %v963_v19, %v1880_v16 }
 0x182   :  { %v1851_v47 = vpop.permute.xlu1 %468  ;;  %v489_v21 = vpop.permute.xlu0 %488 }
 0x183   :  { %v500_v48 = vadd.f32 %v489_v21, %v474_v53  ;;  %v477_v46 = vadd.f32 %v1851_v47, %v451_v7  ;;  %v1111_v47 = vmul.f32 %v1107_v51, %v1904_v24 }
 0x184   :  { %882 = vrot.lane.b32.xlu1 %v873_v10, %s1466_s9  ;;  %884 = vrot.lane.b32.xlu0 %v874_v27, %s1466_s9 }
 0x186   :  { %v491_v25 = vpop.permute.xlu1 %490  ;;  %v493_v26 = vpop.permute.xlu0 %492 }
 0x187   :  { %v501_v8 = vadd.f32 %v491_v25, %v475_v15  ;;  %v502_v2 = vadd.f32 %v493_v26, %v476_v54 }
 0x188   :  { %886 = vrot.lane.b32.xlu1 %v875_v30, %s1466_s9  ;;  %906 = vrot.lane.b32.xlu0 %v898_v31, %s1467_s11  ;;  %v964_v31 = vmul.f32 %v963_v19, %v1865_v36 }
 0x18a   :  { %v1861_v32 = vpop.permute.xlu1 %494  ;;  %v515_v35 = vpop.permute.xlu0 %514 }
 0x18b   :  { %v526_v17 = vadd.f32 %v515_v35, %v500_v48  ;;  %v503_v23 = vadd.f32 %v1861_v32, %v477_v46  ;;  %v759_v35 = vmul.f32 %v757_v28, %v1782_v60  ;;  %v966_v60 = vmul.f32 %v963_v19, %v1873_v37 }
 0x18c   :  { %908 = vrot.lane.b32.xlu1 %v899_v14, %s1467_s11  ;;  %910 = vrot.lane.b32.xlu0 %v900_v50, %s1467_s11 }
 0x18e   :  { %v517_v34 = vpop.permute.xlu1 %516  ;;  %v519_v39 = vpop.permute.xlu0 %518 }
 0x18f   :  { %v527_v21 = vadd.f32 %v517_v34, %v501_v8  ;;  %v528_v10 = vadd.f32 %v519_v39, %v502_v2  ;;  %v760_v34 = vmul.f32 %v757_v28, %v1784_v62  ;;  %v761_v62 = vmul.f32 %v757_v28, %v1793_v6 }
 0x190   :  { %912 = vrot.lane.b32.xlu1 %v901_v40, %s1467_s11  ;;  %946 = vrot.lane.b32.xlu0 %v938_v43, %s1462_s29 }
 0x192   :  { %v521_v45 = vpop.permute.xlu1 %520  ;;  %v541_v52 = vpop.permute.xlu0 %540 }
 0x193   :  { %v552_v4 = vadd.f32 %v541_v52, %v526_v17  ;;  %v529_v14 = vadd.f32 %v521_v45, %v503_v23  ;;  %v965_v52 = vmul.f32 %v963_v19, %v1871_v29  ;;  %v989_v17 = vstv %s1350_s23 }
 0x194   :  { %948 = vrot.lane.b32.xlu1 %v939_v3, %s1462_s29  ;;  %950 = vrot.lane.b32.xlu0 %v940_v11, %s1462_s29  ;;  %v1133_v11 = vstv %s1356_s21  ;;  %v990_v7 = vmul.f32 %v989_v17, %v1865_v36 }
 0x195   :  { %v1134_v48 = vmul.f32 %v1133_v11, %v1882_v49  ;;  %v1137_v28 = vmul.f32 %v1133_v11, %v1904_v24 }
 0x196   :  { %v543_v41 = vpop.permute.xlu1 %542  ;;  %v545_v59 = vpop.permute.xlu0 %544 }
 0x197   :  { %v553_v63 = vadd.f32 %v543_v41, %v527_v21  ;;  %v554_v25 = vadd.f32 %v545_v59, %v528_v10  ;;  %v993_v21 = vmul.f32 %v989_v17, %v1880_v16 }
 0x198   :  { %952 = vrot.lane.b32.xlu1 %v941_v0, %s1462_s29  ;;  %1116 = vrot.lane.b32.xlu0 %v1108_v13, %s1462_s29  ;;  %v1135_v0 = vmul.f32 %v1133_v11, %v1892_v42  ;;  %v1136_v13 = vmul.f32 %v1133_v11, %v1894_v5 }
 0x19a   :  { %v547_v9 = vpop.permute.xlu1 %546  ;;  %v567_v12 = vpop.permute.xlu0 %566 }
 0x19b   :  { %v578_v27 = vadd.f32 %v567_v12, %v552_v4  ;;  %v555_v32 = vadd.f32 %v547_v9, %v529_v14  ;;  %v991_v9 = vmul.f32 %v989_v17, %v1871_v29  ;;  %v992_v12 = vmul.f32 %v989_v17, %v1873_v37 }
 0x19c   :  { %1118 = vrot.lane.b32.xlu1 %v1109_v18, %s1462_s29  ;;  %1120 = vrot.lane.b32.xlu0 %v1110_v20, %s1462_s29 }
 0x19d   :  { %v1909_v26 = vadd.f32 %v758_v22, %v578_v27 }
 0x19e   :  { %v569_v30 = vpop.permute.xlu1 %568  ;;  %v571_v55 = vpop.permute.xlu0 %570 }
 0x19f   :  { %v579_v50 = vadd.f32 %v569_v30, %v553_v63  ;;  %v580_v33 = vadd.f32 %v571_v55, %v554_v25 }
 0x1a0   :  { %1122 = vrot.lane.b32.xlu1 %v1111_v47, %s1462_s29  ;;  %972 = vrot.lane.b32.xlu0 %v964_v31, %s1463_s3  ;;  %s1357_s29 = sld [smem:[#allocation7 + $0x2d]] }
 0x1a1   :  { %v1917_v39 = vadd.f32 %v759_v35, %v579_v50  ;;  %v1919_v40 = vadd.f32 %v760_v34, %v580_v33  ;;  %v1015_v35 = vstv %s1351_s24 }
 0x1a2   :  { %v573_v43 = vpop.permute.xlu1 %572  ;;  %v607_v38 = vpop.permute.xlu0 %606  ;;  %v1016_v34 = vmul.f32 %v1015_v35, %v1865_v36 }
 0x1a3   :  { %v581_v45 = vadd.f32 %v573_v43, %v555_v32  ;;  %v618_v3 = vadd.f32 %v607_v38, %v1814_v44 }
 0x1a4   :  { %974 = vrot.lane.b32.xlu1 %v965_v52, %s1463_s3  ;;  %976 = vrot.lane.b32.xlu0 %v966_v60, %s1463_s3  ;;  %v1017_v60 = vmul.f32 %v1015_v35, %v1871_v29 }
 0x1a5   :  { %v1927_v53 = vadd.f32 %v761_v62, %v581_v45  ;;  %v1018_v45 = vmul.f32 %v1015_v35, %v1873_v37 }
 0x1a6   :  { %v609_v51 = vpop.permute.xlu1 %608  ;;  %v611_v61 = vpop.permute.xlu0 %610  ;;  %v1159_v19 = vstv %s1357_s29 }
 0x1a7   :  { %v619_v41 = vadd.f32 %v609_v51, %v1822_v57  ;;  %v620_v44 = vadd.f32 %v611_v61, %v1824_v58  ;;  %v1160_v10 = vmul.f32 %v1159_v19, %v1882_v49  ;;  %v1161_v30 = vmul.f32 %v1159_v19, %v1892_v42 }
 0x1a8   :  { %978 = vrot.lane.b32.xlu1 %v967_v56, %s1463_s3  ;;  %1142 = vrot.lane.b32.xlu0 %v1134_v48, %s1463_s3  ;;  %v1162_v55 = vmul.f32 %v1159_v19, %v1894_v5  ;;  %v1163_v33 = vmul.f32 %v1159_v19, %v1904_v24  ;;  %v1019_v56 = vmul.f32 %v1015_v35, %v1880_v16 }
 0x1aa   :  { %v613_v6 = vpop.permute.xlu1 %612  ;;  %v633_v59 = vpop.permute.xlu0 %632 }
 0x1ab   :  { %v621_v15 = vadd.f32 %v613_v6, %v1831_v1  ;;  %v644_v54 = vadd.f32 %v633_v59, %v618_v3  ;;  %v927_v6 = vstv %s1347_s25 }
 0x1ac   :  { %1144 = vrot.lane.b32.xlu1 %v1135_v0, %s1463_s3  ;;  %1146 = vrot.lane.b32.xlu0 %v1136_v13, %s1463_s3 }
 0x1ae   :  { %v635_v57 = vpop.permute.xlu1 %634  ;;  %v637_v58 = vpop.permute.xlu0 %636 }
 0x1af   :  { %v645_v8 = vadd.f32 %v635_v57, %v619_v41  ;;  %v646_v2 = vadd.f32 %v637_v58, %v620_v44  ;;  %v1041_v57 = vstv %s1352_s26  ;;  %v928_v58 = vmul.f32 %v927_v6, %v1865_v36 }
 0x1b0   :  { %1148 = vrot.lane.b32.xlu1 %v1137_v28, %s1463_s3  ;;  %998 = vrot.lane.b32.xlu0 %v990_v7, %s1464_s5  ;;  %s1358_s3 = sld [smem:[#allocation7 + $0x2e]] }
 0x1b2   :  { %v639_v1 = vpop.permute.xlu1 %638  ;;  %v659_v4 = vpop.permute.xlu0 %658 }
 0x1b3   :  { %v647_v18 = vadd.f32 %v639_v1, %v621_v15  ;;  %v670_v20 = vadd.f32 %v659_v4, %v644_v54  ;;  %v1042_v1 = vmul.f32 %v1041_v57, %v1865_v36 }
 0x1b4   :  { %1000 = vrot.lane.b32.xlu1 %v991_v9, %s1464_s5  ;;  %1002 = vrot.lane.b32.xlu0 %v992_v12, %s1464_s5  ;;  %v929_v12 = vmul.f32 %v927_v6, %v1871_v29 }
 0x1b6   :  { %v661_v22 = vpop.permute.xlu1 %660  ;;  %v663_v46 = vpop.permute.xlu0 %662  ;;  %v1185_v62 = vstv %s1358_s3 }
 0x1b7   :  { %v671_v27 = vadd.f32 %v661_v22, %v645_v8  ;;  %v672_v23 = vadd.f32 %v663_v46, %v646_v2  ;;  %v1186_v48 = vmul.f32 %v1185_v62, %v1882_v49  ;;  %v1187_v13 = vmul.f32 %v1185_v62, %v1892_v42 }
 0x1b8   :  { %1004 = vrot.lane.b32.xlu1 %v993_v21, %s1464_s5  ;;  %1168 = vrot.lane.b32.xlu0 %v1160_v10, %s1464_s5  ;;  %v1188_v15 = vmul.f32 %v1185_v62, %v1894_v5  ;;  %v1189_v2 = vmul.f32 %v1185_v62, %v1904_v24  ;;  %v1043_v21 = vmul.f32 %v1041_v57, %v1871_v29 }
 0x1b9   :  { %v1044_v10 = vmul.f32 %v1041_v57, %v1873_v37 }
 0x1ba   :  { %v665_v63 = vpop.permute.xlu1 %664  ;;  %v685_v25 = vpop.permute.xlu0 %684 }
 0x1bb   :  { %v673_v47 = vadd.f32 %v665_v63, %v647_v18  ;;  %v696_v31 = vadd.f32 %v685_v25, %v670_v20  ;;  %v930_v18 = vmul.f32 %v927_v6, %v1873_v37  ;;  %v931_v25 = vmul.f32 %v927_v6, %v1880_v16 }
 0x1bc   :  { %1170 = vrot.lane.b32.xlu1 %v1161_v30, %s1464_s5  ;;  %1172 = vrot.lane.b32.xlu0 %v1162_v55, %s1464_s5 }
 0x1be   :  { %v687_v14 = vpop.permute.xlu1 %686  ;;  %v689_v50 = vpop.permute.xlu0 %688 }
 0x1bf   :  { %v697_v32 = vadd.f32 %v687_v14, %v671_v27  ;;  %v698_v43 = vadd.f32 %v689_v50, %v672_v23 }
 0x1c0   :  { %1174 = vrot.lane.b32.xlu1 %v1163_v33, %s1464_s5  ;;  %1024 = vrot.lane.b32.xlu0 %v1016_v34, %s1465_s7  ;;  %s1359_s5 = sld [smem:[#allocation7 + $0x2f]] }
 0x1c2   :  { %v691_v38 = vpop.permute.xlu1 %690  ;;  %v711_v52 = vpop.permute.xlu0 %710 }
 0x1c3   :  { %v699_v3 = vadd.f32 %v691_v38, %v673_v47  ;;  %v722_v11 = vadd.f32 %v711_v52, %v696_v31  ;;  %v1045_v31 = vmul.f32 %v1041_v57, %v1880_v16  ;;  %v1067_v52 = vstv %s1353_s27 }
 0x1c4   :  { %1026 = vrot.lane.b32.xlu1 %v1017_v60, %s1465_s7  ;;  %1028 = vrot.lane.b32.xlu0 %v1018_v45, %s1465_s7  ;;  %v1068_v45 = vmul.f32 %v1067_v52, %v1865_v36  ;;  %v1071_v6 = vmul.f32 %v1067_v52, %v1880_v16 }
 0x1c6   :  { %v713_v51 = vpop.permute.xlu1 %712  ;;  %v715_v61 = vpop.permute.xlu0 %714  ;;  %v1211_v63 = vstv %s1359_s5 }
 0x1c7   :  { %v723_v41 = vadd.f32 %v713_v51, %v697_v32  ;;  %v724_v44 = vadd.f32 %v715_v61, %v698_v43  ;;  %v1212_v35 = vmul.f32 %v1211_v63, %v1882_v49  ;;  %v1213_v34 = vmul.f32 %v1211_v63, %v1892_v42 }
 0x1c8   :  { %1030 = vrot.lane.b32.xlu1 %v1019_v56, %s1465_s7  ;;  %1194 = vrot.lane.b32.xlu0 %v1186_v48, %s1465_s7  ;;  %v1214_v32 = vmul.f32 %v1211_v63, %v1894_v5  ;;  %v1215_v60 = vmul.f32 %v1211_v63, %v1904_v24  ;;  %v1069_v51 = vmul.f32 %v1067_v52, %v1871_v29 }
 0x1c9   :  { %v1070_v61 = vmul.f32 %v1067_v52, %v1873_v37 }
 0x1ca   :  { %v717_v59 = vpop.permute.xlu1 %716  ;;  %v737_v0 = vpop.permute.xlu0 %736 }
 0x1cb   :  { %v725_v54 = vadd.f32 %v717_v59, %v699_v3  ;;  %v748_v17 = vadd.f32 %v737_v0, %v722_v11 }
 0x1cc   :  { %1196 = vrot.lane.b32.xlu1 %v1187_v13, %s1465_s7  ;;  %1198 = vrot.lane.b32.xlu0 %v1188_v15, %s1465_s7 }
 0x1cd   :  { %v1973_v28 = vadd.f32 %v928_v58, %v748_v17 }
 0x1ce   :  { %v739_v7 = vpop.permute.xlu1 %738  ;;  %v741_v8 = vpop.permute.xlu0 %740 }
 0x1cf   :  { %v749_v4 = vadd.f32 %v739_v7, %v723_v41  ;;  %v750_v9 = vadd.f32 %v741_v8, %v724_v44 }
 0x1d0   :  { %1200 = vrot.lane.b32.xlu1 %v1189_v2, %s1465_s7  ;;  %1050 = vrot.lane.b32.xlu0 %v1042_v1, %s1466_s9  ;;  %s1360_s7 = sld [smem:[#allocation7 + $0x30]] }
 0x1d1   :  { %v1981_v20 = vadd.f32 %v929_v12, %v749_v4  ;;  %v1983_v19 = vadd.f32 %v930_v18, %v750_v9 }
 0x1d2   :  { %v743_v22 = vpop.permute.xlu1 %742  ;;  %v777_v46 = vpop.permute.xlu0 %776 }
 0x1d3   :  { %v751_v27 = vadd.f32 %v743_v22, %v725_v54  ;;  %v788_v23 = vadd.f32 %v777_v46, %v1909_v26 }
 0x1d4   :  { %1052 = vrot.lane.b32.xlu1 %v1043_v21, %s1466_s9  ;;  %1054 = vrot.lane.b32.xlu0 %v1044_v10, %s1466_s9 }
 0x1d5   :  { %v1991_v30 = vadd.f32 %v931_v25, %v751_v27 }
 0x1d6   :  { %v779_v55 = vpop.permute.xlu1 %778  ;;  %v781_v47 = vpop.permute.xlu0 %780  ;;  %v1237_v41 = vstv %s1360_s7 }
 0x1d7   :  { %v789_v14 = vadd.f32 %v779_v55, %v1917_v39  ;;  %v790_v26 = vadd.f32 %v781_v47, %v1919_v40  ;;  %v1238_v59 = vmul.f32 %v1237_v41, %v1882_v49  ;;  %v1239_v15 = vmul.f32 %v1237_v41, %v1892_v42 }
 0x1d8   :  { %1056 = vrot.lane.b32.xlu1 %v1045_v31, %s1466_s9  ;;  %1220 = vrot.lane.b32.xlu0 %v1212_v35, %s1466_s9  ;;  %v1240_v54 = vmul.f32 %v1237_v41, %v1894_v5  ;;  %v1241_v7 = vmul.f32 %v1237_v41, %v1904_v24 }
 0x1da   :  { %v783_v50 = vpop.permute.xlu1 %782  ;;  %v803_v33 = vpop.permute.xlu0 %802 }
 0x1db   :  { %v791_v43 = vadd.f32 %v783_v50, %v1927_v53  ;;  %v814_v38 = vadd.f32 %v803_v33, %v788_v23 }
 0x1dc   :  { %1222 = vrot.lane.b32.xlu1 %v1213_v34, %s1466_s9  ;;  %1224 = vrot.lane.b32.xlu0 %v1214_v32, %s1466_s9 }
 0x1de   :  { %v805_v39 = vpop.permute.xlu1 %804  ;;  %v807_v40 = vpop.permute.xlu0 %806 }
 0x1df   :  { %v815_v3 = vadd.f32 %v805_v39, %v789_v14  ;;  %v816_v11 = vadd.f32 %v807_v40, %v790_v26 }
 0x1e0   :  { %1226 = vrot.lane.b32.xlu1 %v1215_v60, %s1466_s9  ;;  %1076 = vrot.lane.b32.xlu0 %v1068_v45, %s1467_s11  ;;  %s1354_s9 = sld [smem:[#allocation7 + $0x2a]] }
 0x1e2   :  { %v809_v53 = vpop.permute.xlu1 %808  ;;  %v829_v62 = vpop.permute.xlu0 %828 }
 0x1e3   :  { %v817_v56 = vadd.f32 %v809_v53, %v791_v43  ;;  %v840_v48 = vadd.f32 %v829_v62, %v814_v38 }
 0x1e4   :  { %1078 = vrot.lane.b32.xlu1 %v1069_v51, %s1467_s11  ;;  %1080 = vrot.lane.b32.xlu0 %v1070_v61, %s1467_s11 }
 0x1e6   :  { %v831_v36 = vpop.permute.xlu1 %830  ;;  %v833_v44 = vpop.permute.xlu0 %832  ;;  %v1097_v10 = vstv %s1354_s9 }
 0x1e7   :  { %v841_v0 = vadd.f32 %v831_v36, %v815_v3  ;;  %v842_v13 = vadd.f32 %v833_v44, %v816_v11  ;;  %v1098_v55 = vmul.f32 %v1097_v10, %v1882_v49  ;;  %v1099_v50 = vmul.f32 %v1097_v10, %v1892_v42 }
 0x1e8   :  { %1082 = vrot.lane.b32.xlu1 %v1071_v6, %s1467_s11  ;;  %1246 = vrot.lane.b32.xlu0 %v1238_v59, %s1467_s11  ;;  %v1100_v33 = vmul.f32 %v1097_v10, %v1894_v5  ;;  %v1101_v40 = vmul.f32 %v1097_v10, %v1904_v24 }
 0x1ea   :  { %v835_v29 = vpop.permute.xlu1 %834  ;;  %v855_v37 = vpop.permute.xlu0 %854 }
 0x1eb   :  { %v843_v17 = vadd.f32 %v835_v29, %v817_v56  ;;  %v866_v57 = vadd.f32 %v855_v37, %v840_v48 }
 0x1ec   :  { %1248 = vrot.lane.b32.xlu1 %v1239_v15, %s1467_s11  ;;  %1250 = vrot.lane.b32.xlu0 %v1240_v54, %s1467_s11 }
 0x1ee   :  { %v857_v16 = vpop.permute.xlu1 %856  ;;  %v859_v58 = vpop.permute.xlu0 %858 }
 0x1ef   :  { %v867_v8 = vadd.f32 %v857_v16, %v841_v0  ;;  %v868_v2 = vadd.f32 %v859_v58, %v842_v13 }
 0x1f0   :  { %1252 = vrot.lane.b32.xlu1 %v1241_v7, %s1467_s11  ;;  %s1468_s11 = smov [#allocation8]  }
 0x1f1   :  { %s1300_s0 = sshll.u32 %s1468_s11, 4  ;;  %s1301_s0 = int_to_ptr.vmem [resolvable:$true] %s1300_s0 }
 0x1f2   :  { %v861_v1 = vpop.permute.xlu1 %860  ;;  %v881_v4 = vpop.permute.xlu0 %880  ;;  %s1428_s28 = scalar_lea.vmem %s1301_s0, 512  ;;  %p1433_p0 = scmp.lt.s32.totalorder %s1301_s0, %s1301_s0 }
 0x1f3   :  { %v869_v9 = vadd.f32 %v861_v1, %v843_v17  ;;  %v892_v12 = vadd.f32 %v881_v4, %v866_v57  ;;  %p1429_p13 = scmp.ne.s32.totalorder %s1301_s0, %s1428_s28  ;;  %p1434_p1 = scmp.lt.s32.totalorder %s1428_s28, %s1428_s28 }
 0x1f5   :  { %p1435_p2 = por %p1434_p1, %p1433_p0 }
 0x1f6   :  { %v883_v18 = vpop.permute.xlu1 %882  ;;  %v885_v22 = vpop.permute.xlu0 %884 }
 0x1f7   :  { %v893_v46 = vadd.f32 %v883_v18, %v867_v8  ;;  %v894_v21 = vadd.f32 %v885_v22, %v868_v2  ;;  %p1436_p3 = pnand %p1435_p2, %p1429_p13 }
 0x1fa   :  { %v887_v27 = vpop.permute.xlu1 %886  ;;  %v907_v23 = vpop.permute.xlu0 %906 }
 0x1fb   :  { %v895_v63 = vadd.f32 %v887_v27, %v869_v9  ;;  %v918_v25 = vadd.f32 %v907_v23, %v892_v12 }
 0x1fd   :  { %v1102_v47 = vadd.f32 %v1098_v55, %v918_v25 }
 0x1fe   :  { %v909_v31 = vpop.permute.xlu1 %908  ;;  %v911_v35 = vpop.permute.xlu0 %910 }
 0x1ff   :  { %v919_v14 = vadd.f32 %v909_v31, %v893_v46  ;;  %v920_v26 = vadd.f32 %v911_v35, %v894_v21 }
 0x201   :  { %v1103_v34 = vadd.f32 %v1099_v50, %v919_v14  ;;  %v1104_v32 = vadd.f32 %v1100_v33, %v920_v26 }
 0x202   :  { %v913_v43 = vpop.permute.xlu1 %912  ;;  %v947_v38 = vpop.permute.xlu0 %946 }
 0x203   :  { %v921_v52 = vadd.f32 %v913_v43, %v895_v63  ;;  %v958_v39 = vadd.f32 %v947_v38, %v1973_v28 }
 0x205   :  { %v1105_v60 = vadd.f32 %v1101_v40, %v921_v52 }
 0x206   :  { %v949_v49 = vpop.permute.xlu1 %948  ;;  %v951_v45 = vpop.permute.xlu0 %950 }
 0x207   :  { %v959_v3 = vadd.f32 %v949_v49, %v1981_v20  ;;  %v960_v11 = vadd.f32 %v951_v45, %v1983_v19 }
 0x20a   :  { %v953_v53 = vpop.permute.xlu1 %952  ;;  %v1117_v42 = vpop.permute.xlu0 %1116 }
 0x20b   :  { %v961_v5 = vadd.f32 %v953_v53, %v1991_v30  ;;  %v1128_v62 = vadd.f32 %v1117_v42, %v1102_v47 }
 0x20e   :  { %v1119_v51 = vpop.permute.xlu1 %1118  ;;  %v1121_v61 = vpop.permute.xlu0 %1120 }
 0x20f   :  { %v1129_v56 = vadd.f32 %v1119_v51, %v1103_v34  ;;  %v1130_v48 = vadd.f32 %v1121_v61, %v1104_v32 }
 0x212   :  { %v1123_v41 = vpop.permute.xlu1 %1122  ;;  %v973_v28 = vpop.permute.xlu0 %972 }
 0x213   :  { %v1131_v36 = vadd.f32 %v1123_v41, %v1105_v60  ;;  %v984_v24 = vadd.f32 %v973_v28, %v958_v39 }
 0x216   :  { %v975_v44 = vpop.permute.xlu1 %974  ;;  %v977_v6 = vpop.permute.xlu0 %976 }
 0x217   :  { %v985_v59 = vadd.f32 %v975_v44, %v959_v3  ;;  %v986_v0 = vadd.f32 %v977_v6, %v960_v11 }
 0x21a   :  { %v979_v20 = vpop.permute.xlu1 %978  ;;  %v1143_v13 = vpop.permute.xlu0 %1142 }
 0x21b   :  { %v987_v19 = vadd.f32 %v979_v20, %v961_v5  ;;  %v1154_v35 = vadd.f32 %v1143_v13, %v1128_v62 }
 0x21e   :  { %v1145_v29 = vpop.permute.xlu1 %1144  ;;  %v1147_v37 = vpop.permute.xlu0 %1146 }
 0x21f   :  { %v1155_v34 = vadd.f32 %v1145_v29, %v1129_v56  ;;  %v1156_v32 = vadd.f32 %v1147_v37, %v1130_v48 }
 0x222   :  { %v1149_v15 = vpop.permute.xlu1 %1148  ;;  %v999_v30 = vpop.permute.xlu0 %998 }
 0x223   :  { %v1010_v14 = vadd.f32 %v999_v30, %v984_v24  ;;  %v1157_v3 = vadd.f32 %v1149_v15, %v1131_v36 }
 0x226   :  { %v1001_v54 = vpop.permute.xlu1 %1000  ;;  %v1003_v17 = vpop.permute.xlu0 %1002 }
 0x227   :  { %v1011_v52 = vadd.f32 %v1001_v54, %v985_v59  ;;  %v1012_v39 = vadd.f32 %v1003_v17, %v986_v0 }
 0x22a   :  { %v1005_v57 = vpop.permute.xlu1 %1004  ;;  %v1169_v16 = vpop.permute.xlu0 %1168 }
 0x22b   :  { %v1180_v26 = vadd.f32 %v1169_v16, %v1154_v35  ;;  %v1013_v28 = vadd.f32 %v1005_v57, %v987_v19 }
 0x22e   :  { %v1171_v58 = vpop.permute.xlu1 %1170  ;;  %v1173_v7 = vpop.permute.xlu0 %1172 }
 0x22f   :  { %v1181_v40 = vadd.f32 %v1171_v58, %v1155_v34  ;;  %v1182_v60 = vadd.f32 %v1173_v7, %v1156_v32 }
 0x232   :  { %v1175_v8 = vpop.permute.xlu1 %1174  ;;  %v1025_v2 = vpop.permute.xlu0 %1024 }
 0x233   :  { %v1036_v43 = vadd.f32 %v1025_v2, %v1010_v14  ;;  %v1183_v56 = vadd.f32 %v1175_v8, %v1157_v3 }
 0x236   :  { %v1027_v1 = vpop.permute.xlu1 %1026  ;;  %v1029_v4 = vpop.permute.xlu0 %1028 }
 0x237   :  { %v1037_v11 = vadd.f32 %v1027_v1, %v1011_v52  ;;  %v1038_v53 = vadd.f32 %v1029_v4, %v1012_v39 }
 0x23a   :  { %v1031_v9 = vpop.permute.xlu1 %1030  ;;  %v1195_v12 = vpop.permute.xlu0 %1194 }
 0x23b   :  { %v1206_v38 = vadd.f32 %v1195_v12, %v1180_v26  ;;  %v1039_v0 = vadd.f32 %v1031_v9, %v1013_v28 }
 0x23e   :  { %v1197_v18 = vpop.permute.xlu1 %1196  ;;  %v1199_v22 = vpop.permute.xlu0 %1198 }
 0x23f   :  { %v1207_v62 = vadd.f32 %v1197_v18, %v1181_v40  ;;  %v1208_v51 = vadd.f32 %v1199_v22, %v1182_v60 }
 0x242   :  { %v1201_v46 = vpop.permute.xlu1 %1200  ;;  %v1051_v21 = vpop.permute.xlu0 %1050 }
 0x243   :  { %v1062_v49 = vadd.f32 %v1051_v21, %v1036_v43  ;;  %v1209_v20 = vadd.f32 %v1201_v46, %v1183_v56 }
 0x246   :  { %v1053_v10 = vpop.permute.xlu1 %1052  ;;  %v1055_v27 = vpop.permute.xlu0 %1054 }
 0x247   :  { %v1063_v48 = vadd.f32 %v1053_v10, %v1037_v11  ;;  %v1064_v24 = vadd.f32 %v1055_v27, %v1038_v53 }
 0x24a   :  { %v1057_v23 = vpop.permute.xlu1 %1056  ;;  %v1221_v63 = vpop.permute.xlu0 %1220 }
 0x24b   :  { %v1232_v45 = vadd.f32 %v1221_v63, %v1206_v38  ;;  %v1065_v17 = vadd.f32 %v1057_v23, %v1039_v0 }
 0x24e   :  { %v1223_v25 = vpop.permute.xlu1 %1222  ;;  %v1225_v55 = vpop.permute.xlu0 %1224 }
 0x24f   :  { %v1233_v44 = vadd.f32 %v1223_v25, %v1207_v62  ;;  %v1234_v6 = vadd.f32 %v1225_v55, %v1208_v51 }
 0x252   :  { %v1227_v47 = vpop.permute.xlu1 %1226  ;;  %v1077_v31 = vpop.permute.xlu0 %1076 }
 0x253   :  { %v1088_v61 = vadd.f32 %v1077_v31, %v1062_v49  ;;  %v1235_v16 = vadd.f32 %v1227_v47, %v1209_v20 }
 0x256   :  { %v1079_v50 = vpop.permute.xlu1 %1078  ;;  %v1081_v33 = vpop.permute.xlu0 %1080 }
 0x257   :  { %v1089_v13 = vadd.f32 %v1079_v50, %v1063_v48  ;;  %v1090_v37 = vadd.f32 %v1081_v33, %v1064_v24 }
 0x25a   :  { %v1083_v42 = vpop.permute.xlu1 %1082  ;;  %v1247_v5 = vpop.permute.xlu0 %1246 }
 0x25b   :  { %v1258_v41 = vadd.f32 %v1247_v5, %v1232_v45  ;;  %v1091_v7 = vadd.f32 %v1083_v42, %v1065_v17 }
 0x25d   :  { %v1262_v59 = vadd.f32 %v1258_v41, %v1088_v61 }
 0x25e   :  { %v1249_v29 = vpop.permute.xlu1 %1248  ;;  %v1251_v36 = vpop.permute.xlu0 %1250 }
 0x25f   :  { %v1361_v15 = vmul.f32 -1.442695, %v1262_v59  ;;  %v1259_v30 = vadd.f32 %v1249_v29, %v1233_v44  ;;  %v1260_v54 = vadd.f32 %v1251_v36, %v1234_v6 }
 0x261   :  { %1378 = vpow2.f32 %v1361_v15  ;;  %v1263_v58 = vadd.f32 %v1259_v30, %v1089_v13  ;;  %v1264_v19 = vadd.f32 %v1260_v54, %v1090_v37 }
 0x262   :  { %v1253_v57 = vpop.permute.xlu1 %1252 }
 0x263   :  { %v1362_v8 = vmul.f32 -1.442695, %v1263_v58  ;;  %v1363_v2 = vmul.f32 -1.442695, %v1264_v19  ;;  %v1261_v1 = vadd.f32 %v1253_v57, %v1235_v16 }
 0x265   :  { %1380 = vpow2.f32 %v1362_v8  ;;  %v1265_v4 = vadd.f32 %v1261_v1, %v1091_v7 }
 0x266   :  { %1382 = vpow2.f32 %v1363_v2 }
 0x267   :  { %v1364_v9 = vmul.f32 -1.442695, %v1265_v4 }
 0x269   :  { %1384 = vpow2.f32 %v1364_v9 }
 0x26b   :  { %v1379_v12 = vpop.eup %1378 }
 0x26c   :  { %v1278_v18 = vadd.f32 1.0, %v1379_v12 }
 0x26e   :  { %1386 = vrcp.f32 %v1278_v18 }
 0x26f   :  { %v1381_v22 = vpop.eup %1380 }
 0x270   :  { %v1383_v46 = vpop.eup %1382  ;;  %v1279_v21 = vadd.f32 1.0, %v1381_v22 }
 0x271   :  { %v1280_v10 = vadd.f32 1.0, %v1383_v46 }
 0x272   :  { %1388 = vrcp.f32 %v1279_v21 }
 0x273   :  { %v1385_v27 = vpop.eup %1384  ;;  %1390 = vrcp.f32 %v1280_v10 }
 0x274   :  { %v1281_v23 = vadd.f32 1.0, %v1385_v27 }
 0x276   :  { %1392 = vrcp.f32 %v1281_v23 }
 0x278   :  { %v1387_v63 = vpop.eup %1386 }
 0x279   :  { %1291 = vst.msk [vmem:[#allocation8] sm:$0xff] %vm1290_vm3, %v1387_v63 }
 0x27c   :  { %v1389_v25 = vpop.eup %1388 }
 0x27d   :  { %v1391_v55 = vpop.eup %1390  ;;  %1292 = vst.msk [vmem:[#allocation8 + $0x8] sm:$0xff] %vm1290_vm3, %v1389_v25 }
 0x27e   :  { %1293 = vst.msk [vmem:[#allocation8 + $0x10] sm:$0xff] %vm1290_vm3, %v1391_v55 }
 0x280   :  { %v1393_v47 = vpop.eup %1392 }
 0x281   :  { %1294 = vst.msk [vmem:[#allocation8 + $0x18] sm:$0xff] %vm1290_vm3, %v1393_v47 }
 0x282   :  { %1439 = shalt.err (!%p1436_p3)
}
 0x283   :  { %s1440_s6 = scalar_lea.hbm %s2047_s2, 512 }
 0x284   :  { %p1441_p4 = scmp.ne.s32.totalorder %s2047_s2, %s1440_s6  ;;  %p1444_p5 = scmp.lt.u32.totalorder %s1440_s6, %s2047_s2 }
 0x286   :  { %p1446_p6 = pnand %p1444_p5, %p1441_p4 }
 0x288   :  { %1449 = shalt.err (!%p1446_p6)
}
 0x289   :  { %1306 = dma.vmem_to_hbm [thread:$0]  %s1301_s0, 512, %s2047_s2, [#allocation5], %s1457_s1, %s1457_s1, %s1458_s22  }
 0x28a   :  { %1454 = dma.done.wait [#allocation5], 512  }
 0x28b   :  { %1455 = vsyncadd [#allocation5], 4294966784 }
 0x28c   :  { %1310 = vsyncpa [#allocation4], 1 }
 0x28d   :  { %1311 = vsyncpa [#allocation5], 1 }
 0x28e   :  { %1312 = vsyncpa [#allocation6], 1 }

</bundles_post_ra>
